<compile_context>
chip_gen: v6e
topology: v6e:2x2x1
jax: 0.10.0
libtpu: 0.0.40
codegen_flags: <defaults>
</compile_context>

<pallas_src>
import functools

import jax
import jax.numpy as jnp
import numpy as np
from jax import lax
from jax.experimental import pallas as pl
from jax.experimental.pallas import tpu as pltpu


def _roi_pool_kernel(batch_idx_ref, box_ref, x_ref, out_ref, *, H, W, PH, PW):
    # batch_idx_ref: SMEM (K,) int32   -- batch index per (sorted) ROI, used by index_map
    # box_ref:       SMEM (4*K,) int32 -- flattened rounded (x1, y1, x2, y2) per ROI
    # x_ref:         VMEM (1, H, W, TC)   -- feature-map block of the ROI's batch element
    # out_ref:       VMEM (1, PH*PW, TC)  -- pooled output for this ROI / channel tile
    del batch_idx_ref  # only consumed by the input index_map
    k = pl.program_id(1)

    start_w = box_ref[4 * k + 0]
    start_h = box_ref[4 * k + 1]
    end_w = box_ref[4 * k + 2]
    end_h = box_ref[4 * k + 3]

    roi_w = jnp.maximum(end_w - start_w + 1, 1)
    roi_h = jnp.maximum(end_h - start_h + 1, 1)
    bin_h = roi_h.astype(jnp.float32) / jnp.float32(PH)
    bin_w = roi_w.astype(jnp.float32) / jnp.float32(PW)

    x = x_ref[0]                                    # (H, W, TC), compute in input dtype
    neg_inf = jnp.array(-jnp.inf, dtype=x.dtype)
    zero = jnp.zeros((), dtype=x.dtype)

    h_iota = lax.broadcasted_iota(jnp.int32, (H, W, 1), 0)   # h index, lane-broadcastable
    w_iota = lax.broadcasted_iota(jnp.int32, (W, 1), 0)      # w index

    for ph in range(PH):
        hstart = jnp.clip(
            jnp.floor(jnp.float32(ph) * bin_h).astype(jnp.int32) + start_h, 0, H)
        hend = jnp.clip(
            jnp.ceil(jnp.float32(ph + 1) * bin_h).astype(jnp.int32) + start_h, 0, H)
        # h-mask / h-band max computed ONCE per ph (hoisted out of the pw loop).
        h_mask = (h_iota >= hstart) & (h_iota < hend)              # (H, W, 1)
        band = jnp.max(jnp.where(h_mask, x, neg_inf), axis=0)      # (W, TC)
        h_empty = hend <= hstart

        rows = []
        for pw in range(PW):
            wstart = jnp.clip(
                jnp.floor(jnp.float32(pw) * bin_w).astype(jnp.int32) + start_w, 0, W)
            wend = jnp.clip(
                jnp.ceil(jnp.float32(pw + 1) * bin_w).astype(jnp.int32) + start_w, 0, W)
            w_mask = (w_iota >= wstart) & (w_iota < wend)           # (W, 1)
            m = jnp.max(jnp.where(w_mask, band, neg_inf), axis=0)   # (TC,)
            is_empty = h_empty | (wend <= wstart)
            rows.append(jnp.where(is_empty, zero, m))
        out_ref[0, ph * PW:(ph + 1) * PW, :] = jnp.stack(rows, axis=0)


def _pick_channel_tile(C, H, W, itemsize, budget_bytes=8 << 20):
    """Largest channel tile (multiple of 128 when tiling) whose block fits the budget."""
    if H * W * C * itemsize <= budget_bytes or C % 128 != 0:
        return C
    best = 128
    tc = 128
    while tc <= C:
        if C % tc == 0 and H * W * tc * itemsize <= budget_bytes:
            best = tc
        tc += 128
    return best


def roi_pool(x_nchw, rois, output_size, spatial_scale=1.0):
    """RoI max-pooling.  x_nchw: (N, C, H, W); rois: (K, 5) = (batch, x1, y1, x2, y2).
    Returns (K, C, PH, PW)."""
    PH, PW = output_size
    N, C, H, W = x_nchw.shape
    K = rois.shape[0]

    # channels-last layout (glue)
    x = jnp.transpose(x_nchw, (0, 2, 3, 1))                    # (N, H, W, C)

    batch_idx = rois[:, 0].astype(jnp.int32)
    # torchvision uses roundf (half away from zero); ROI coords are non-negative
    # by spec, so floor(v*scale + 0.5) matches.
    # TODO(synk): guard/adjust rounding if negative box coordinates must be supported.
    box = jnp.floor(rois[:, 1:5] * jnp.float32(spatial_scale) + 0.5).astype(jnp.int32)

    # Sort ROIs by batch index so consecutive grid steps reuse the resident
    # input block (Pallas skips the DMA when the block index is unchanged).
    order = jnp.argsort(batch_idx)
    inv_order = jnp.argsort(order)
    batch_idx_s = batch_idx[order]
    box_flat = box[order].reshape(-1)                          # (4*K,) 1-D SMEM operand

    itemsize = jnp.dtype(x.dtype).itemsize
    TC = _pick_channel_tile(C, H, W, itemsize)
    num_ct = C // TC

    in_block_bytes = H * W * TC * itemsize
    out_block_bytes = PH * PW * TC * itemsize
    vmem_limit = int(min(max(4 * in_block_bytes + 2 * out_block_bytes + (4 << 20),
                             16 << 20), 48 << 20))

    kernel = functools.partial(_roi_pool_kernel, H=H, W=W, PH=PH, PW=PW)
    pooled = pl.pallas_call(
        kernel,
        out_shape=jax.ShapeDtypeStruct((K, PH * PW, C), x.dtype),
        grid_spec=pltpu.PrefetchScalarGridSpec(
            num_scalar_prefetch=2,
            grid=(num_ct, K),   # (channel tiles: parallel, ROIs: arbitrary for block reuse)
            in_specs=[
                # data-dependent batch selection via scalar-prefetched batch index
                pl.BlockSpec((1, H, W, TC),
                             lambda ct, k, bidx, box: (bidx[k], 0, 0, ct)),
            ],
            out_specs=pl.BlockSpec((1, PH * PW, TC),
                                   lambda ct, k, bidx, box: (k, 0, ct)),
        ),
        compiler_params=pltpu.CompilerParams(
            dimension_semantics=("parallel", "arbitrary"),
            vmem_limit_bytes=vmem_limit),
    )(batch_idx_s, box_flat, x)

    pooled = pooled[inv_order]                                 # undo the batch sort
    pooled = pooled.reshape(K, PH, PW, C)
    return jnp.transpose(pooled, (0, 3, 1, 2))                 # (K, C, PH, PW)


class RoIPool:
    """Mirror of torchvision.ops.RoIPool (forward only)."""

    def __init__(self, output_size, spatial_scale):
        if isinstance(output_size, int):
            output_size = (output_size, output_size)
        self.output_size = tuple(output_size)
        self.spatial_scale = float(spatial_scale)

    def __call__(self, input, rois):
        return roi_pool(input, rois, self.output_size, self.spatial_scale)


def _roi_pool_reference(x, rois, output_size, spatial_scale):
    """NumPy reference mirroring torchvision's CPU roi_pool semantics."""
    x = np.asarray(x)
    rois = np.asarray(rois)
    N, C, H, W = x.shape
    PH, PW = output_size
    K = rois.shape[0]
    out = np.zeros((K, C, PH, PW), dtype=x.dtype)
    for k in range(K):
        b = int(rois[k, 0])
        sw = int(np.floor(rois[k, 1] * spatial_scale + 0.5))
        sh = int(np.floor(rois[k, 2] * spatial_scale + 0.5))
        ew = int(np.floor(rois[k, 3] * spatial_scale + 0.5))
        eh = int(np.floor(rois[k, 4] * spatial_scale + 0.5))
        roi_w = max(ew - sw + 1, 1)
        roi_h = max(eh - sh + 1, 1)
        bh = np.float32(roi_h) / np.float32(PH)
        bw = np.float32(roi_w) / np.float32(PW)
        for ph in range(PH):
            hs = min(max(int(np.floor(np.float32(ph) * bh)) + sh, 0), H)
            he = min(max(int(np.ceil(np.float32(ph + 1) * bh)) + sh, 0), H)
            for pw in range(PW):
                ws = min(max(int(np.floor(np.float32(pw) * bw)) + sw, 0), W)
                we = min(max(int(np.ceil(np.float32(pw + 1) * bw)) + sw, 0), W)
                if he <= hs or we <= ws:
                    out[k, :, ph, pw] = 0.0
                else:
                    out[k, :, ph, pw] = x[b, :, hs:he, ws:we].max(axis=(1, 2))
    return out


if __name__ == "__main__":
    N, C, H, W = 2, 4, 16, 16
    K = 6
    output_size = (3, 3)
    spatial_scale = 0.5  # boxes live on a 32x32 image, feature map is 16x16

    key = jax.random.PRNGKey(0)
    k1, k2, k3, k4 = jax.random.split(key, 4)
    x = jax.random.normal(k1, (N, C, H, W), dtype=jnp.float32)
    batch = jax.random.randint(k2, (K,), 0, N).astype(jnp.float32)
    xy1 = jax.random.uniform(k3, (K, 2), minval=0.0, maxval=20.0, dtype=jnp.float32)
    wh = jax.random.uniform(k4, (K, 2), minval=2.0, maxval=12.0, dtype=jnp.float32)
    xy2 = jnp.clip(xy1 + wh, 0.0, 31.0)
    rois = jnp.concatenate([batch[:, None], xy1, xy2], axis=1)  # (K, 5)

    pool = RoIPool(output_size, spatial_scale)
    out = pool(x, rois)
    out = jax.block_until_ready(out)

    ref = _roi_pool_reference(x, rois, output_size, spatial_scale)
    np.testing.assert_allclose(np.asarray(out), ref, rtol=1e-6, atol=1e-6)
    assert out.shape == (K, C, output_size[0], output_size[1])

    print("KERNEL_OK")
</pallas_src>

<mosaic_0001>
module attributes {stable_mosaic.version = 11 : i64} {
  func.func @_roi_pool_kernel(%arg0: i32, %arg1: i32, %arg2: memref<6xi32, #tpu.memory_space<smem>>, %arg3: memref<24xi32, #tpu.memory_space<smem>>, %arg4: memref<1x16x16x4xf32, #tpu.memory_space<vmem>>, %arg5: memref<1x9x4xf32, #tpu.memory_space<vmem>>) attributes {dimension_semantics = [#tpu.dimension_semantics<parallel>, #tpu.dimension_semantics<arbitrary>], iteration_bounds = array<i64: 1, 6>, scalar_prefetch = 2 : i64, scratch_operands = 0 : i64, tpu.core_type = #tpu.core_type<tc>, window_params = [{transform_indices = @transform_0, window_bounds = array<i64: 1, 16, 16, 4>}, {transform_indices = @transform_1, window_bounds = array<i64: 1, 9, 4>}]} {
    %c4_i32 = arith.constant 4 : i32
    %0 = arith.muli %c4_i32, %arg1 : i32
    %c0_i32 = arith.constant 0 : i32
    %1 = arith.addi %0, %c0_i32 : i32
    %2 = arith.index_cast %1 : i32 to index
    %3 = memref.load %arg3[%2] : memref<24xi32, #tpu.memory_space<smem>>
    %c4_i32_0 = arith.constant 4 : i32
    %4 = arith.muli %c4_i32_0, %arg1 : i32
    %c1_i32 = arith.constant 1 : i32
    %5 = arith.addi %4, %c1_i32 : i32
    %6 = arith.index_cast %5 : i32 to index
    %7 = memref.load %arg3[%6] : memref<24xi32, #tpu.memory_space<smem>>
    %c4_i32_1 = arith.constant 4 : i32
    %8 = arith.muli %c4_i32_1, %arg1 : i32
    %c2_i32 = arith.constant 2 : i32
    %9 = arith.addi %8, %c2_i32 : i32
    %10 = arith.index_cast %9 : i32 to index
    %11 = memref.load %arg3[%10] : memref<24xi32, #tpu.memory_space<smem>>
    %c4_i32_2 = arith.constant 4 : i32
    %12 = arith.muli %c4_i32_2, %arg1 : i32
    %c3_i32 = arith.constant 3 : i32
    %13 = arith.addi %12, %c3_i32 : i32
    %14 = arith.index_cast %13 : i32 to index
    %15 = memref.load %arg3[%14] : memref<24xi32, #tpu.memory_space<smem>>
    %16 = arith.subi %11, %3 : i32
    %c1_i32_3 = arith.constant 1 : i32
    %17 = arith.addi %16, %c1_i32_3 : i32
    %c1_i32_4 = arith.constant 1 : i32
    %18 = arith.maxsi %17, %c1_i32_4 : i32
    %19 = arith.subi %15, %7 : i32
    %c1_i32_5 = arith.constant 1 : i32
    %20 = arith.addi %19, %c1_i32_5 : i32
    %c1_i32_6 = arith.constant 1 : i32
    %21 = arith.maxsi %20, %c1_i32_6 : i32
    %22 = arith.sitofp %21 : i32 to f32
    %cst = arith.constant 3.000000e+00 : f32
    %23 = arith.divf %22, %cst : f32
    %24 = arith.sitofp %18 : i32 to f32
    %cst_7 = arith.constant 3.000000e+00 : f32
    %25 = arith.divf %24, %cst_7 : f32
    %c0 = arith.constant 0 : index
    %c0_8 = arith.constant 0 : index
    %c0_9 = arith.constant 0 : index
    %c0_10 = arith.constant 0 : index
    %26 = vector.load %arg4[%c0, %c0_8, %c0_9, %c0_10] : memref<1x16x16x4xf32, #tpu.memory_space<vmem>>, vector<1x16x16x4xf32>
    %27 = vector.shape_cast %26 : vector<1x16x16x4xf32> to vector<16x16x4xf32>
    %28 = tpu.iota {dimensions = array<i32: 0>} : vector<16x16x1xi32>
    %29 = tpu.iota {dimensions = array<i32: 0>} : vector<16x1xi32>
    %cst_11 = arith.constant 0.000000e+00 : f32
    %30 = arith.mulf %cst_11, %23 : f32
    %31 = math.floor %30 : f32
    %32 = arith.fptosi %31 : f32 to i32
    %33 = arith.addi %32, %7 : i32
    %c0_i32_12 = arith.constant 0 : i32
    %c16_i32 = arith.constant 16 : i32
    %34 = arith.maxsi %c0_i32_12, %33 : i32
    %35 = arith.minsi %c16_i32, %34 : i32
    %cst_13 = arith.constant 1.000000e+00 : f32
    %36 = arith.mulf %cst_13, %23 : f32
    %37 = math.ceil %36 : f32
    %38 = arith.fptosi %37 : f32 to i32
    %39 = arith.addi %38, %7 : i32
    %c0_i32_14 = arith.constant 0 : i32
    %c16_i32_15 = arith.constant 16 : i32
    %40 = arith.maxsi %c0_i32_14, %39 : i32
    %41 = arith.minsi %c16_i32_15, %40 : i32
    %42 = vector.broadcast %35 : i32 to vector<16x16x1xi32>
    %43 = arith.cmpi sge, %28, %42 : vector<16x16x1xi32>
    %44 = vector.broadcast %41 : i32 to vector<16x16x1xi32>
    %45 = arith.cmpi slt, %28, %44 : vector<16x16x1xi32>
    %46 = arith.andi %43, %45 : vector<16x16x1xi1>
    %cst_16 = arith.constant 0xFF800000 : f32
    %47 = vector.shape_cast %46 : vector<16x16x1xi1> to vector<16x16x1xi1>
    %48 = vector.broadcast %47 : vector<16x16x1xi1> to vector<16x16x4xi1>
    %49 = vector.broadcast %cst_16 : f32 to vector<16x16x4xf32>
    %50 = arith.select %48, %27, %49 : vector<16x16x4xi1>, vector<16x16x4xf32>
    %cst_17 = arith.constant dense<0xFF800000> : vector<16x4xf32>
    %51 = vector.multi_reduction <maximumf>, %50, %cst_17 [0] : vector<16x16x4xf32> to vector<16x4xf32>
    %52 = arith.cmpi sle, %41, %35 : i32
    %cst_18 = arith.constant 0.000000e+00 : f32
    %53 = arith.mulf %cst_18, %25 : f32
    %54 = math.floor %53 : f32
    %55 = arith.fptosi %54 : f32 to i32
    %56 = arith.addi %55, %3 : i32
    %c0_i32_19 = arith.constant 0 : i32
    %c16_i32_20 = arith.constant 16 : i32
    %57 = arith.maxsi %c0_i32_19, %56 : i32
    %58 = arith.minsi %c16_i32_20, %57 : i32
    %cst_21 = arith.constant 1.000000e+00 : f32
    %59 = arith.mulf %cst_21, %25 : f32
    %60 = math.ceil %59 : f32
    %61 = arith.fptosi %60 : f32 to i32
    %62 = arith.addi %61, %3 : i32
    %c0_i32_22 = arith.constant 0 : i32
    %c16_i32_23 = arith.constant 16 : i32
    %63 = arith.maxsi %c0_i32_22, %62 : i32
    %64 = arith.minsi %c16_i32_23, %63 : i32
    %65 = vector.broadcast %58 : i32 to vector<16x1xi32>
    %66 = arith.cmpi sge, %29, %65 : vector<16x1xi32>
    %67 = vector.broadcast %64 : i32 to vector<16x1xi32>
    %68 = arith.cmpi slt, %29, %67 : vector<16x1xi32>
    %69 = arith.andi %66, %68 : vector<16x1xi1>
    %cst_24 = arith.constant 0xFF800000 : f32
    %70 = vector.shape_cast %69 : vector<16x1xi1> to vector<16x1xi1>
    %71 = vector.broadcast %70 : vector<16x1xi1> to vector<16x4xi1>
    %72 = vector.broadcast %cst_24 : f32 to vector<16x4xf32>
    %73 = arith.select %71, %51, %72 : vector<16x4xi1>, vector<16x4xf32>
    %cst_25 = arith.constant dense<0xFF800000> : vector<4xf32>
    %74 = vector.multi_reduction <maximumf>, %73, %cst_25 [0] : vector<16x4xf32> to vector<4xf32>
    %75 = arith.cmpi sle, %64, %58 : i32
    %76 = arith.ori %52, %75 : i1
    %cst_26 = arith.constant 0.000000e+00 : f32
    %77 = vector.broadcast %cst_26 : f32 to vector<4xf32>
    %78 = arith.select %76, %77, %74 : vector<4xf32>
    %cst_27 = arith.constant 1.000000e+00 : f32
    %79 = arith.mulf %cst_27, %25 : f32
    %80 = math.floor %79 : f32
    %81 = arith.fptosi %80 : f32 to i32
    %82 = arith.addi %81, %3 : i32
    %c0_i32_28 = arith.constant 0 : i32
    %c16_i32_29 = arith.constant 16 : i32
    %83 = arith.maxsi %c0_i32_28, %82 : i32
    %84 = arith.minsi %c16_i32_29, %83 : i32
    %cst_30 = arith.constant 2.000000e+00 : f32
    %85 = arith.mulf %cst_30, %25 : f32
    %86 = math.ceil %85 : f32
    %87 = arith.fptosi %86 : f32 to i32
    %88 = arith.addi %87, %3 : i32
    %c0_i32_31 = arith.constant 0 : i32
    %c16_i32_32 = arith.constant 16 : i32
    %89 = arith.maxsi %c0_i32_31, %88 : i32
    %90 = arith.minsi %c16_i32_32, %89 : i32
    %91 = vector.broadcast %84 : i32 to vector<16x1xi32>
    %92 = arith.cmpi sge, %29, %91 : vector<16x1xi32>
    %93 = vector.broadcast %90 : i32 to vector<16x1xi32>
    %94 = arith.cmpi slt, %29, %93 : vector<16x1xi32>
    %95 = arith.andi %92, %94 : vector<16x1xi1>
    %cst_33 = arith.constant 0xFF800000 : f32
    %96 = vector.shape_cast %95 : vector<16x1xi1> to vector<16x1xi1>
    %97 = vector.broadcast %96 : vector<16x1xi1> to vector<16x4xi1>
    %98 = vector.broadcast %cst_33 : f32 to vector<16x4xf32>
    %99 = arith.select %97, %51, %98 : vector<16x4xi1>, vector<16x4xf32>
    %cst_34 = arith.constant dense<0xFF800000> : vector<4xf32>
    %100 = vector.multi_reduction <maximumf>, %99, %cst_34 [0] : vector<16x4xf32> to vector<4xf32>
    %101 = arith.cmpi sle, %90, %84 : i32
    %102 = arith.ori %52, %101 : i1
    %cst_35 = arith.constant 0.000000e+00 : f32
    %103 = vector.broadcast %cst_35 : f32 to vector<4xf32>
    %104 = arith.select %102, %103, %100 : vector<4xf32>
    %cst_36 = arith.constant 2.000000e+00 : f32
    %105 = arith.mulf %cst_36, %25 : f32
    %106 = math.floor %105 : f32
    %107 = arith.fptosi %106 : f32 to i32
    %108 = arith.addi %107, %3 : i32
    %c0_i32_37 = arith.constant 0 : i32
    %c16_i32_38 = arith.constant 16 : i32
    %109 = arith.maxsi %c0_i32_37, %108 : i32
    %110 = arith.minsi %c16_i32_38, %109 : i32
    %cst_39 = arith.constant 3.000000e+00 : f32
    %111 = arith.mulf %cst_39, %25 : f32
    %112 = math.ceil %111 : f32
    %113 = arith.fptosi %112 : f32 to i32
    %114 = arith.addi %113, %3 : i32
    %c0_i32_40 = arith.constant 0 : i32
    %c16_i32_41 = arith.constant 16 : i32
    %115 = arith.maxsi %c0_i32_40, %114 : i32
    %116 = arith.minsi %c16_i32_41, %115 : i32
    %117 = vector.broadcast %110 : i32 to vector<16x1xi32>
    %118 = arith.cmpi sge, %29, %117 : vector<16x1xi32>
    %119 = vector.broadcast %116 : i32 to vector<16x1xi32>
    %120 = arith.cmpi slt, %29, %119 : vector<16x1xi32>
    %121 = arith.andi %118, %120 : vector<16x1xi1>
    %cst_42 = arith.constant 0xFF800000 : f32
    %122 = vector.shape_cast %121 : vector<16x1xi1> to vector<16x1xi1>
    %123 = vector.broadcast %122 : vector<16x1xi1> to vector<16x4xi1>
    %124 = vector.broadcast %cst_42 : f32 to vector<16x4xf32>
    %125 = arith.select %123, %51, %124 : vector<16x4xi1>, vector<16x4xf32>
    %cst_43 = arith.constant dense<0xFF800000> : vector<4xf32>
    %126 = vector.multi_reduction <maximumf>, %125, %cst_43 [0] : vector<16x4xf32> to vector<4xf32>
    %127 = arith.cmpi sle, %116, %110 : i32
    %128 = arith.ori %52, %127 : i1
    %cst_44 = arith.constant 0.000000e+00 : f32
    %129 = vector.broadcast %cst_44 : f32 to vector<4xf32>
    %130 = arith.select %128, %129, %126 : vector<4xf32>
    %131 = vector.shape_cast %78 : vector<4xf32> to vector<1x4xf32>
    %132 = vector.shape_cast %104 : vector<4xf32> to vector<1x4xf32>
    %133 = vector.shape_cast %130 : vector<4xf32> to vector<1x4xf32>
    %134 = tpu.concatenate %131, %132, %133 in 0 : vector<1x4xf32>, vector<1x4xf32>, vector<1x4xf32> -> vector<3x4xf32>
    %c0_45 = arith.constant 0 : index
    %c0_46 = arith.constant 0 : index
    %c0_47 = arith.constant 0 : index
    %135 = vector.load %arg5[%c0_45, %c0_46, %c0_47] : memref<1x9x4xf32, #tpu.memory_space<vmem>>, vector<1x3x4xf32>
    %136 = vector.shape_cast %135 : vector<1x3x4xf32> to vector<3x4xf32>
    %137 = vector.shape_cast %134 : vector<3x4xf32> to vector<1x3x4xf32>
    tpu.vector_store %arg5[%c0_45, %c0_46, %c0_47], %137 {strides = array<i32>} : memref<1x9x4xf32, #tpu.memory_space<vmem>>, vector<1x3x4xf32>,
    %cst_48 = arith.constant 1.000000e+00 : f32
    %138 = arith.mulf %cst_48, %23 : f32
    %139 = math.floor %138 : f32
    %140 = arith.fptosi %139 : f32 to i32
    %141 = arith.addi %140, %7 : i32
    %c0_i32_49 = arith.constant 0 : i32
    %c16_i32_50 = arith.constant 16 : i32
    %142 = arith.maxsi %c0_i32_49, %141 : i32
    %143 = arith.minsi %c16_i32_50, %142 : i32
    %cst_51 = arith.constant 2.000000e+00 : f32
    %144 = arith.mulf %cst_51, %23 : f32
    %145 = math.ceil %144 : f32
    %146 = arith.fptosi %145 : f32 to i32
    %147 = arith.addi %146, %7 : i32
    %c0_i32_52 = arith.constant 0 : i32
    %c16_i32_53 = arith.constant 16 : i32
    %148 = arith.maxsi %c0_i32_52, %147 : i32
    %149 = arith.minsi %c16_i32_53, %148 : i32
    %150 = vector.broadcast %143 : i32 to vector<16x16x1xi32>
    %151 = arith.cmpi sge, %28, %150 : vector<16x16x1xi32>
    %152 = vector.broadcast %149 : i32 to vector<16x16x1xi32>
    %153 = arith.cmpi slt, %28, %152 : vector<16x16x1xi32>
    %154 = arith.andi %151, %153 : vector<16x16x1xi1>
    %cst_54 = arith.constant 0xFF800000 : f32
    %155 = vector.shape_cast %154 : vector<16x16x1xi1> to vector<16x16x1xi1>
    %156 = vector.broadcast %155 : vector<16x16x1xi1> to vector<16x16x4xi1>
    %157 = vector.broadcast %cst_54 : f32 to vector<16x16x4xf32>
    %158 = arith.select %156, %27, %157 : vector<16x16x4xi1>, vector<16x16x4xf32>
    %cst_55 = arith.constant dense<0xFF800000> : vector<16x4xf32>
    %159 = vector.multi_reduction <maximumf>, %158, %cst_55 [0] : vector<16x16x4xf32> to vector<16x4xf32>
    %160 = arith.cmpi sle, %149, %143 : i32
    %cst_56 = arith.constant 0.000000e+00 : f32
    %161 = arith.mulf %cst_56, %25 : f32
    %162 = math.floor %161 : f32
    %163 = arith.fptosi %162 : f32 to i32
    %164 = arith.addi %163, %3 : i32
    %c0_i32_57 = arith.constant 0 : i32
    %c16_i32_58 = arith.constant 16 : i32
    %165 = arith.maxsi %c0_i32_57, %164 : i32
    %166 = arith.minsi %c16_i32_58, %165 : i32
    %cst_59 = arith.constant 1.000000e+00 : f32
    %167 = arith.mulf %cst_59, %25 : f32
    %168 = math.ceil %167 : f32
    %169 = arith.fptosi %168 : f32 to i32
    %170 = arith.addi %169, %3 : i32
    %c0_i32_60 = arith.constant 0 : i32
    %c16_i32_61 = arith.constant 16 : i32
    %171 = arith.maxsi %c0_i32_60, %170 : i32
    %172 = arith.minsi %c16_i32_61, %171 : i32
    %173 = vector.broadcast %166 : i32 to vector<16x1xi32>
    %174 = arith.cmpi sge, %29, %173 : vector<16x1xi32>
    %175 = vector.broadcast %172 : i32 to vector<16x1xi32>
    %176 = arith.cmpi slt, %29, %175 : vector<16x1xi32>
    %177 = arith.andi %174, %176 : vector<16x1xi1>
    %cst_62 = arith.constant 0xFF800000 : f32
    %178 = vector.shape_cast %177 : vector<16x1xi1> to vector<16x1xi1>
    %179 = vector.broadcast %178 : vector<16x1xi1> to vector<16x4xi1>
    %180 = vector.broadcast %cst_62 : f32 to vector<16x4xf32>
    %181 = arith.select %179, %159, %180 : vector<16x4xi1>, vector<16x4xf32>
    %cst_63 = arith.constant dense<0xFF800000> : vector<4xf32>
    %182 = vector.multi_reduction <maximumf>, %181, %cst_63 [0] : vector<16x4xf32> to vector<4xf32>
    %183 = arith.cmpi sle, %172, %166 : i32
    %184 = arith.ori %160, %183 : i1
    %cst_64 = arith.constant 0.000000e+00 : f32
    %185 = vector.broadcast %cst_64 : f32 to vector<4xf32>
    %186 = arith.select %184, %185, %182 : vector<4xf32>
    %cst_65 = arith.constant 1.000000e+00 : f32
    %187 = arith.mulf %cst_65, %25 : f32
    %188 = math.floor %187 : f32
    %189 = arith.fptosi %188 : f32 to i32
    %190 = arith.addi %189, %3 : i32
    %c0_i32_66 = arith.constant 0 : i32
    %c16_i32_67 = arith.constant 16 : i32
    %191 = arith.maxsi %c0_i32_66, %190 : i32
    %192 = arith.minsi %c16_i32_67, %191 : i32
    %cst_68 = arith.constant 2.000000e+00 : f32
    %193 = arith.mulf %cst_68, %25 : f32
    %194 = math.ceil %193 : f32
    %195 = arith.fptosi %194 : f32 to i32
    %196 = arith.addi %195, %3 : i32
    %c0_i32_69 = arith.constant 0 : i32
    %c16_i32_70 = arith.constant 16 : i32
    %197 = arith.maxsi %c0_i32_69, %196 : i32
    %198 = arith.minsi %c16_i32_70, %197 : i32
    %199 = vector.broadcast %192 : i32 to vector<16x1xi32>
    %200 = arith.cmpi sge, %29, %199 : vector<16x1xi32>
    %201 = vector.broadcast %198 : i32 to vector<16x1xi32>
    %202 = arith.cmpi slt, %29, %201 : vector<16x1xi32>
    %203 = arith.andi %200, %202 : vector<16x1xi1>
    %cst_71 = arith.constant 0xFF800000 : f32
    %204 = vector.shape_cast %203 : vector<16x1xi1> to vector<16x1xi1>
    %205 = vector.broadcast %204 : vector<16x1xi1> to vector<16x4xi1>
    %206 = vector.broadcast %cst_71 : f32 to vector<16x4xf32>
    %207 = arith.select %205, %159, %206 : vector<16x4xi1>, vector<16x4xf32>
    %cst_72 = arith.constant dense<0xFF800000> : vector<4xf32>
    %208 = vector.multi_reduction <maximumf>, %207, %cst_72 [0] : vector<16x4xf32> to vector<4xf32>
    %209 = arith.cmpi sle, %198, %192 : i32
    %210 = arith.ori %160, %209 : i1
    %cst_73 = arith.constant 0.000000e+00 : f32
    %211 = vector.broadcast %cst_73 : f32 to vector<4xf32>
    %212 = arith.select %210, %211, %208 : vector<4xf32>
    %cst_74 = arith.constant 2.000000e+00 : f32
    %213 = arith.mulf %cst_74, %25 : f32
    %214 = math.floor %213 : f32
    %215 = arith.fptosi %214 : f32 to i32
    %216 = arith.addi %215, %3 : i32
    %c0_i32_75 = arith.constant 0 : i32
    %c16_i32_76 = arith.constant 16 : i32
    %217 = arith.maxsi %c0_i32_75, %216 : i32
    %218 = arith.minsi %c16_i32_76, %217 : i32
    %cst_77 = arith.constant 3.000000e+00 : f32
    %219 = arith.mulf %cst_77, %25 : f32
    %220 = math.ceil %219 : f32
    %221 = arith.fptosi %220 : f32 to i32
    %222 = arith.addi %221, %3 : i32
    %c0_i32_78 = arith.constant 0 : i32
    %c16_i32_79 = arith.constant 16 : i32
    %223 = arith.maxsi %c0_i32_78, %222 : i32
    %224 = arith.minsi %c16_i32_79, %223 : i32
    %225 = vector.broadcast %218 : i32 to vector<16x1xi32>
    %226 = arith.cmpi sge, %29, %225 : vector<16x1xi32>
    %227 = vector.broadcast %224 : i32 to vector<16x1xi32>
    %228 = arith.cmpi slt, %29, %227 : vector<16x1xi32>
    %229 = arith.andi %226, %228 : vector<16x1xi1>
    %cst_80 = arith.constant 0xFF800000 : f32
    %230 = vector.shape_cast %229 : vector<16x1xi1> to vector<16x1xi1>
    %231 = vector.broadcast %230 : vector<16x1xi1> to vector<16x4xi1>
    %232 = vector.broadcast %cst_80 : f32 to vector<16x4xf32>
    %233 = arith.select %231, %159, %232 : vector<16x4xi1>, vector<16x4xf32>
    %cst_81 = arith.constant dense<0xFF800000> : vector<4xf32>
    %234 = vector.multi_reduction <maximumf>, %233, %cst_81 [0] : vector<16x4xf32> to vector<4xf32>
    %235 = arith.cmpi sle, %224, %218 : i32
    %236 = arith.ori %160, %235 : i1
    %cst_82 = arith.constant 0.000000e+00 : f32
    %237 = vector.broadcast %cst_82 : f32 to vector<4xf32>
    %238 = arith.select %236, %237, %234 : vector<4xf32>
    %239 = vector.shape_cast %186 : vector<4xf32> to vector<1x4xf32>
    %240 = vector.shape_cast %212 : vector<4xf32> to vector<1x4xf32>
    %241 = vector.shape_cast %238 : vector<4xf32> to vector<1x4xf32>
    %242 = tpu.concatenate %239, %240, %241 in 0 : vector<1x4xf32>, vector<1x4xf32>, vector<1x4xf32> -> vector<3x4xf32>
    %c0_83 = arith.constant 0 : index
    %c3 = arith.constant 3 : index
    %c0_84 = arith.constant 0 : index
    %243 = vector.load %arg5[%c0_83, %c3, %c0_84] : memref<1x9x4xf32, #tpu.memory_space<vmem>>, vector<1x3x4xf32>
    %244 = vector.shape_cast %243 : vector<1x3x4xf32> to vector<3x4xf32>
    %245 = vector.shape_cast %242 : vector<3x4xf32> to vector<1x3x4xf32>
    tpu.vector_store %arg5[%c0_83, %c3, %c0_84], %245 {strides = array<i32>} : memref<1x9x4xf32, #tpu.memory_space<vmem>>, vector<1x3x4xf32>,
    %cst_85 = arith.constant 2.000000e+00 : f32
    %246 = arith.mulf %cst_85, %23 : f32
    %247 = math.floor %246 : f32
    %248 = arith.fptosi %247 : f32 to i32
    %249 = arith.addi %248, %7 : i32
    %c0_i32_86 = arith.constant 0 : i32
    %c16_i32_87 = arith.constant 16 : i32
    %250 = arith.maxsi %c0_i32_86, %249 : i32
    %251 = arith.minsi %c16_i32_87, %250 : i32
    %cst_88 = arith.constant 3.000000e+00 : f32
    %252 = arith.mulf %cst_88, %23 : f32
    %253 = math.ceil %252 : f32
    %254 = arith.fptosi %253 : f32 to i32
    %255 = arith.addi %254, %7 : i32
    %c0_i32_89 = arith.constant 0 : i32
    %c16_i32_90 = arith.constant 16 : i32
    %256 = arith.maxsi %c0_i32_89, %255 : i32
    %257 = arith.minsi %c16_i32_90, %256 : i32
    %258 = vector.broadcast %251 : i32 to vector<16x16x1xi32>
    %259 = arith.cmpi sge, %28, %258 : vector<16x16x1xi32>
    %260 = vector.broadcast %257 : i32 to vector<16x16x1xi32>
    %261 = arith.cmpi slt, %28, %260 : vector<16x16x1xi32>
    %262 = arith.andi %259, %261 : vector<16x16x1xi1>
    %cst_91 = arith.constant 0xFF800000 : f32
    %263 = vector.shape_cast %262 : vector<16x16x1xi1> to vector<16x16x1xi1>
    %264 = vector.broadcast %263 : vector<16x16x1xi1> to vector<16x16x4xi1>
    %265 = vector.broadcast %cst_91 : f32 to vector<16x16x4xf32>
    %266 = arith.select %264, %27, %265 : vector<16x16x4xi1>, vector<16x16x4xf32>
    %cst_92 = arith.constant dense<0xFF800000> : vector<16x4xf32>
    %267 = vector.multi_reduction <maximumf>, %266, %cst_92 [0] : vector<16x16x4xf32> to vector<16x4xf32>
    %268 = arith.cmpi sle, %257, %251 : i32
    %cst_93 = arith.constant 0.000000e+00 : f32
    %269 = arith.mulf %cst_93, %25 : f32
    %270 = math.floor %269 : f32
    %271 = arith.fptosi %270 : f32 to i32
    %272 = arith.addi %271, %3 : i32
    %c0_i32_94 = arith.constant 0 : i32
    %c16_i32_95 = arith.constant 16 : i32
    %273 = arith.maxsi %c0_i32_94, %272 : i32
    %274 = arith.minsi %c16_i32_95, %273 : i32
    %cst_96 = arith.constant 1.000000e+00 : f32
    %275 = arith.mulf %cst_96, %25 : f32
    %276 = math.ceil %275 : f32
    %277 = arith.fptosi %276 : f32 to i32
    %278 = arith.addi %277, %3 : i32
    %c0_i32_97 = arith.constant 0 : i32
    %c16_i32_98 = arith.constant 16 : i32
    %279 = arith.maxsi %c0_i32_97, %278 : i32
    %280 = arith.minsi %c16_i32_98, %279 : i32
    %281 = vector.broadcast %274 : i32 to vector<16x1xi32>
    %282 = arith.cmpi sge, %29, %281 : vector<16x1xi32>
    %283 = vector.broadcast %280 : i32 to vector<16x1xi32>
    %284 = arith.cmpi slt, %29, %283 : vector<16x1xi32>
    %285 = arith.andi %282, %284 : vector<16x1xi1>
    %cst_99 = arith.constant 0xFF800000 : f32
    %286 = vector.shape_cast %285 : vector<16x1xi1> to vector<16x1xi1>
    %287 = vector.broadcast %286 : vector<16x1xi1> to vector<16x4xi1>
    %288 = vector.broadcast %cst_99 : f32 to vector<16x4xf32>
    %289 = arith.select %287, %267, %288 : vector<16x4xi1>, vector<16x4xf32>
    %cst_100 = arith.constant dense<0xFF800000> : vector<4xf32>
    %290 = vector.multi_reduction <maximumf>, %289, %cst_100 [0] : vector<16x4xf32> to vector<4xf32>
    %291 = arith.cmpi sle, %280, %274 : i32
    %292 = arith.ori %268, %291 : i1
    %cst_101 = arith.constant 0.000000e+00 : f32
    %293 = vector.broadcast %cst_101 : f32 to vector<4xf32>
    %294 = arith.select %292, %293, %290 : vector<4xf32>
    %cst_102 = arith.constant 1.000000e+00 : f32
    %295 = arith.mulf %cst_102, %25 : f32
    %296 = math.floor %295 : f32
    %297 = arith.fptosi %296 : f32 to i32
    %298 = arith.addi %297, %3 : i32
    %c0_i32_103 = arith.constant 0 : i32
    %c16_i32_104 = arith.constant 16 : i32
    %299 = arith.maxsi %c0_i32_103, %298 : i32
    %300 = arith.minsi %c16_i32_104, %299 : i32
    %cst_105 = arith.constant 2.000000e+00 : f32
    %301 = arith.mulf %cst_105, %25 : f32
    %302 = math.ceil %301 : f32
    %303 = arith.fptosi %302 : f32 to i32
    %304 = arith.addi %303, %3 : i32
    %c0_i32_106 = arith.constant 0 : i32
    %c16_i32_107 = arith.constant 16 : i32
    %305 = arith.maxsi %c0_i32_106, %304 : i32
    %306 = arith.minsi %c16_i32_107, %305 : i32
    %307 = vector.broadcast %300 : i32 to vector<16x1xi32>
    %308 = arith.cmpi sge, %29, %307 : vector<16x1xi32>
    %309 = vector.broadcast %306 : i32 to vector<16x1xi32>
    %310 = arith.cmpi slt, %29, %309 : vector<16x1xi32>
    %311 = arith.andi %308, %310 : vector<16x1xi1>
    %cst_108 = arith.constant 0xFF800000 : f32
    %312 = vector.shape_cast %311 : vector<16x1xi1> to vector<16x1xi1>
    %313 = vector.broadcast %312 : vector<16x1xi1> to vector<16x4xi1>
    %314 = vector.broadcast %cst_108 : f32 to vector<16x4xf32>
    %315 = arith.select %313, %267, %314 : vector<16x4xi1>, vector<16x4xf32>
    %cst_109 = arith.constant dense<0xFF800000> : vector<4xf32>
    %316 = vector.multi_reduction <maximumf>, %315, %cst_109 [0] : vector<16x4xf32> to vector<4xf32>
    %317 = arith.cmpi sle, %306, %300 : i32
    %318 = arith.ori %268, %317 : i1
    %cst_110 = arith.constant 0.000000e+00 : f32
    %319 = vector.broadcast %cst_110 : f32 to vector<4xf32>
    %320 = arith.select %318, %319, %316 : vector<4xf32>
    %cst_111 = arith.constant 2.000000e+00 : f32
    %321 = arith.mulf %cst_111, %25 : f32
    %322 = math.floor %321 : f32
    %323 = arith.fptosi %322 : f32 to i32
    %324 = arith.addi %323, %3 : i32
    %c0_i32_112 = arith.constant 0 : i32
    %c16_i32_113 = arith.constant 16 : i32
    %325 = arith.maxsi %c0_i32_112, %324 : i32
    %326 = arith.minsi %c16_i32_113, %325 : i32
    %cst_114 = arith.constant 3.000000e+00 : f32
    %327 = arith.mulf %cst_114, %25 : f32
    %328 = math.ceil %327 : f32
    %329 = arith.fptosi %328 : f32 to i32
    %330 = arith.addi %329, %3 : i32
    %c0_i32_115 = arith.constant 0 : i32
    %c16_i32_116 = arith.constant 16 : i32
    %331 = arith.maxsi %c0_i32_115, %330 : i32
    %332 = arith.minsi %c16_i32_116, %331 : i32
    %333 = vector.broadcast %326 : i32 to vector<16x1xi32>
    %334 = arith.cmpi sge, %29, %333 : vector<16x1xi32>
    %335 = vector.broadcast %332 : i32 to vector<16x1xi32>
    %336 = arith.cmpi slt, %29, %335 : vector<16x1xi32>
    %337 = arith.andi %334, %336 : vector<16x1xi1>
    %cst_117 = arith.constant 0xFF800000 : f32
    %338 = vector.shape_cast %337 : vector<16x1xi1> to vector<16x1xi1>
    %339 = vector.broadcast %338 : vector<16x1xi1> to vector<16x4xi1>
    %340 = vector.broadcast %cst_117 : f32 to vector<16x4xf32>
    %341 = arith.select %339, %267, %340 : vector<16x4xi1>, vector<16x4xf32>
    %cst_118 = arith.constant dense<0xFF800000> : vector<4xf32>
    %342 = vector.multi_reduction <maximumf>, %341, %cst_118 [0] : vector<16x4xf32> to vector<4xf32>
    %343 = arith.cmpi sle, %332, %326 : i32
    %344 = arith.ori %268, %343 : i1
    %cst_119 = arith.constant 0.000000e+00 : f32
    %345 = vector.broadcast %cst_119 : f32 to vector<4xf32>
    %346 = arith.select %344, %345, %342 : vector<4xf32>
    %347 = vector.shape_cast %294 : vector<4xf32> to vector<1x4xf32>
    %348 = vector.shape_cast %320 : vector<4xf32> to vector<1x4xf32>
    %349 = vector.shape_cast %346 : vector<4xf32> to vector<1x4xf32>
    %350 = tpu.concatenate %347, %348, %349 in 0 : vector<1x4xf32>, vector<1x4xf32>, vector<1x4xf32> -> vector<3x4xf32>
    %c0_120 = arith.constant 0 : index
    %c6 = arith.constant 6 : index
    %c0_121 = arith.constant 0 : index
    %351 = vector.load %arg5[%c0_120, %c6, %c0_121] : memref<1x9x4xf32, #tpu.memory_space<vmem>>, vector<1x3x4xf32>
    %352 = vector.shape_cast %351 : vector<1x3x4xf32> to vector<3x4xf32>
    %353 = vector.shape_cast %350 : vector<3x4xf32> to vector<1x3x4xf32>
    tpu.vector_store %arg5[%c0_120, %c6, %c0_121], %353 {strides = array<i32>} : memref<1x9x4xf32, #tpu.memory_space<vmem>>, vector<1x3x4xf32>,
    return
  }
  func.func @transform_0(%arg0: i32, %arg1: i32, %arg2: memref<6xi32, #tpu.memory_space<smem>>, %arg3: memref<24xi32, #tpu.memory_space<smem>>) -> (i32, i32, i32, i32) {
    %0 = arith.index_cast %arg1 : i32 to index
    %1 = memref.load %arg2[%0] : memref<6xi32, #tpu.memory_space<smem>>
    %c0_i32 = arith.constant 0 : i32
    %c0_i32_0 = arith.constant 0 : i32
    %c0_i32_1 = arith.constant 0 : i32
    return %1, %c0_i32, %c0_i32_0, %arg0 : i32, i32, i32, i32
  }
  func.func @transform_1(%arg0: i32, %arg1: i32, %arg2: memref<6xi32, #tpu.memory_space<smem>>, %arg3: memref<24xi32, #tpu.memory_space<smem>>) -> (i32, i32, i32) {
    %c0_i32 = arith.constant 0 : i32
    %c0_i32_0 = arith.constant 0 : i32
    return %arg1, %c0_i32, %arg0 : i32, i32, i32
  }
}

</mosaic_0001>

<bundles_post_ra>
// kernel: tpu_custom_call.1
= control target key start
LH: loop header
LB: loop body
LE: loop exit
PB: predicated region body
PF: predicated region fallthrough
CT: control target
= control target key end

     0   :  { %s2934_s0 = inlined_call_operand.vmem [shape: s32[6], index: 0, kind: input, shape index: {}]   ;;  %s2935_s2 = inlined_call_operand.vmem [shape: f32[2,16,16,4], index: 2, kind: input, shape index: {}]   ;;  %s2936_s3 = inlined_call_operand.vmem [shape: f32[6,9,4], index: 3, kind: output, shape index: {}]   ;;  %s2937_s1 = inlined_call_operand.vmem [shape: s32[24], index: 1, kind: input, shape index: {}]  }
   0x1   :  { %s8_s14 = sshll.u32 %s2934_s0, 4  ;;  %s12_s17 = sshll.u32 %s2937_s1, 4  ;;  %s9_s14 = int_to_ptr.vmem [resolvable:$true] %s8_s14  ;;  %s13_s17 = int_to_ptr.vmem [resolvable:$true] %s12_s17 }
   0x2   :  { %s1293_s18 = scalar_lea.vmem %s9_s14, 16  ;;  %p1298_p1 = scmp.lt.s32.totalorder %s9_s14, %s9_s14 }
   0x3   :  { %p1294_p0 = scmp.ne.s32.totalorder %s9_s14, %s1293_s18  ;;  %p1299_p2 = scmp.lt.s32.totalorder %s1293_s18, %s1293_s18 }
   0x5   :  { %p1300_p3 = por %p1299_p2, %p1298_p1 }
   0x7   :  { %p1301_p4 = pnand %p1300_p3, %p1294_p0 }
   0x9   :  { %1304 = shalt.err (!%p1301_p4)  }
   0xa   :  { %s1343_s19 = smov [#allocation3]   ;;  %s1305_s20 = scalar_lea.vmem %s13_s17, 16 }
   0xb   :  { %11 = dma.vmem_to_smem %s9_s14, 16, %s1343_s19, [#allocation2] }
   0xc   :  { %p1306_p5 = scmp.ne.s32.totalorder %s13_s17, %s1305_s20  ;;  %p1310_p6 = scmp.lt.s32.totalorder %s13_s17, %s13_s17 }
   0xd   :  { %p1311_p7 = scmp.lt.s32.totalorder %s1305_s20, %s1305_s20 }
   0xf   :  { %p1312_p8 = por %p1311_p7, %p1310_p6 }
  0x11   :  { %p1313_p9 = pnand %p1312_p8, %p1306_p5 }
  0x13   :  { %1316 = shalt.err (!%p1313_p9)  }
  0x14   :  { %s1344_s0 = smov [#allocation4]  }
  0x15   :  { %15 = dma.vmem_to_smem %s13_s17, 16, %s1344_s0, [#allocation2] }
  0x16   :  { %1329 = dma.done.wait [#allocation2], 32 }
  0x17   :  { %1330 = vsyncadd [#allocation2], 4294967264 }
  0x18   :  { %17 = sfence }
  0x19   :  { %s1371_s1 = smov 0   ;;  %s1373_s21 = smov 0  }
  0x1a   :  { %s1375_s22 = smov 0  }
  0x1b LB: > { %s32_s23 = sadd.s32 1, %s1337_s21  ;;  %p1130_p10 = scmp.ge.s32.totalorder %s1341_s22, 1  ;;  %s1341_s22 = sphi %s1375_s22, %s23_s22   ;;  %s1337_s21 = sphi %s1373_s21, %s3298_s21   ;;  %s1333_s1 = sphi %s1371_s1, %s3297_s1  }
  0x1c   : > { %p33_p11 = scmp.ge.s32.totalorder %s32_s23, 6  ;;  %p122_p12 = scmp.lt.s32.totalorder %s1341_s22, 7 }
  0x1e   : > { %s3300_s23 = smov (%p33_p11, %s32_s23), 0  ;;  %p123_p13 = pnand %p1130_p10, %p122_p12 }
  0x1f   : > { %s149_s24 = sld [smem:[#allocation3 + %s1333_s1]] (!%p123_p13)  ;;  %s1135_s25 = sshll.u32 (!%p123_p13), %s1333_s1, 2 }
  0x20   : > { %126 = sbr.rel (%p123_p13) target bundleno = 252 (0xfc), region = 24  ;;  %s169_s26 = sadd.s32 (!%p123_p13), 1, %s1135_s25 }
  0x21   : > { %s1393_s27 = sld [smem:[#allocation4 + %s1135_s25]] (!%p123_p13)  ;;  %s171_s29 = sadd.s32 (!%p123_p13), 2, %s1135_s25 }
  0x22   : > { %s1395_s28 = sld [smem:[#allocation4 + %s169_s26]] (!%p123_p13)  ;;  %s173_s4 = sadd.s32 (!%p123_p13), 3, %s1135_s25 }
  0x23   : > { %s172_s30 = sld [smem:[#allocation4 + %s171_s29]] (!%p123_p13) }
  0x24   : > { %s174_s5 = sld [smem:[#allocation4 + %s173_s4]] (!%p123_p13) }
  0x25   : > { %p150_p0 = scmp.lt.s32.totalorder %s149_s24, 1  ;;  %v223_v0 = vlaneseq  ;;  %v2970_v33 = vmov 0  ;;  %v2975_v40 = vmov 0  ;;  %v2979_v45 = vmov 0 }
  0x26   : > { %v2999_v52 = vmov 0  ;;  %v3003_v47 = vmov 0 }
  0x27   : > { %s3302_s24 = smov (!%p150_p0, %s149_s24), 1  ;;  %v1423_v1 = vshrl.u32 %v223_v0, 7 }
  0x28   : > { %s1198_s11 = sshll.u32 %s3302_s24, 8 }
  0x29   : > { %s175_s6 = ssub.s32 %s172_s30, %s1393_s27  ;;  %s1404_s15 = scalar_lea.vmem %s2935_s2, %s1198_s11  ;;  %v1444_v4 = vadd.s32 8, %v1423_v1 }
  0x2a   : > { %s176_s7 = sadd.s32 1, %s175_s6  ;;  %s179_s8 = ssub.s32 %s174_s5, %s1395_s28  ;;  %v1466_v6 = vld [vmem:[%s1404_s15] sm:$0xff]  ;;  %v1469_v7 = vld [vmem:[%s1404_s15 + $0x8] sm:$0xff]  ;;  %v1489_v9 = vld [vmem:[%s1404_s15 + $0x10] sm:$0xff] }
  0x2b   : > { %p177_p1 = scmp.gt.s32.totalorder %s176_s7, 1  ;;  %s180_s9 = sadd.s32 1, %s179_s8  ;;  %v1492_v10 = vld [vmem:[%s1404_s15 + $0x18] sm:$0xff]  ;;  %v1495_v11 = vld [vmem:[%s1404_s15 + $0x20] sm:$0xff]  ;;  %v1498_v12 = vld [vmem:[%s1404_s15 + $0x28] sm:$0xff] }
  0x2c   : > { %p181_p2 = scmp.gt.s32.totalorder %s180_s9, 1  ;;  %v1515_v14 = vld [vmem:[%s1404_s15 + $0x30] sm:$0xff]  ;;  %v1518_v15 = vld [vmem:[%s1404_s15 + $0x38] sm:$0xff]  ;;  %v1521_v16 = vld [vmem:[%s1404_s15 + $0x40] sm:$0xff] }
  0x2d   : > { %s3304_s7 = smov (!%p177_p1, %s176_s7), 1  ;;  %v1524_v17 = vld [vmem:[%s1404_s15 + $0x48] sm:$0xff]  ;;  %v1542_v19 = vld [vmem:[%s1404_s15 + $0x50] sm:$0xff]  ;;  %v1545_v20 = vld [vmem:[%s1404_s15 + $0x58] sm:$0xff] }
  0x2e   : > { %s187_s10 = scvt.s32.f32 %s3304_s7  ;;  %s3306_s9 = smov (!%p181_p2, %s180_s9), 1  ;;  %v1548_v21 = vld [vmem:[%s1404_s15 + $0x60] sm:$0xff]  ;;  %v1571_v23 = vld [vmem:[%s1404_s15 + $0x68] sm:$0xff]  ;;  %v1574_v24 = vld [vmem:[%s1404_s15 + $0x70] sm:$0xff] }
  0x2f   : > { %s183_s16 = scvt.s32.f32 %s3306_s9  ;;  %v1592_v26 = vld [vmem:[%s1404_s15 + $0x78] sm:$0xff]  ;;  %v1595_v27 = vld [vmem:[%s1404_s15 + $0x80] sm:$0xff]  ;;  %v1616_v31 = vld [vmem:[%s1404_s15 + $0x88] sm:$0xff] }
  0x30   : > { %s1399_s12 = smul.f32 0.33333334, %s187_s10  ;;  %v1619_v32 = vld [vmem:[%s1404_s15 + $0x90] sm:$0xff]  ;;  %v1656_v38 = vld [vmem:[%s1404_s15 + $0x98] sm:$0xff]  ;;  %v1659_v39 = vld [vmem:[%s1404_s15 + $0xa0] sm:$0xff] }
  0x31   : > { %s1408_s19 = smul.f32 0.33333334, %s183_s16  ;;  %v1705_v50 = vld [vmem:[%s1404_s15 + $0xb0] sm:$0xff]  ;;  %v1728_v56 = vld [vmem:[%s1404_s15 + $0xc0] sm:$0xff]  ;;  %v1909_v13 = vld [vmem:[%s1404_s15 + $0xe8] sm:$0xff] }
  0x32   : > { %s419_s17 = smul.f32 0.0, %s1399_s12  ;;  %s427_s18 = sceil.f32 %s1399_s12  ;;  %v1731_v57 = vld [vmem:[%s1404_s15 + $0xd0] sm:$0xff]  ;;  %v1755_v63 = vld [vmem:[%s1404_s15 + $0xe0] sm:$0xff] }
  0x33   : > { %s1231_s20 = scvt.f32.s32 %s427_s18  ;;  %s463_s24 = sfloor.f32 %s1399_s12 }
  0x34   : > { %s420_s0 = sfloor.f32 %s419_s17  ;;  %s226_s25 = smul.f32 0.0, %s1408_s19 }
  0x35   : > { %s234_s26 = sceil.f32 %s1408_s19  ;;  %s1229_s30 = scvt.f32.s32 %s420_s0 }
  0x36   : > { %s1227_s29 = scvt.f32.s32 %s234_s26  ;;  %s227_s4 = sfloor.f32 %s226_s25 }
  0x37   : > { %s1414_s5 = sadd.s32 %s1231_s20, %s1393_s27  ;;  %s1225_s6 = scvt.f32.s32 %s227_s4 }
  0x38   : > { %s236_s7 = sadd.s32 %s1227_s29, %s1395_s28  ;;  %s1419_s9 = sadd.s32 %s1229_s30, %s1393_s27 }
  0x39   : > { %p237_p3 = scmp.gt.s32.totalorder %s236_s7, 0  ;;  %p1141_p4 = scmp.lt.s32.totalorder %s236_s7, 16 }
  0x3a   : > { %s229_s8 = sadd.s32 %s1225_s6, %s1395_s28  ;;  %p423_p7 = scmp.gt.s32.totalorder %s1419_s9, 0 }
  0x3b   : > { %p230_p5 = scmp.gt.s32.totalorder %s229_s8, 0  ;;  %p1136_p6 = scmp.lt.s32.totalorder %s229_s8, 16 }
  0x3c   : > { %s3308_s7 = smov (!%p237_p3, %s236_s7), 0  ;;  %p1146_p8 = scmp.lt.s32.totalorder %s1419_s9, 16 }
  0x3d   : > { %s3310_s8 = smov (!%p230_p5, %s229_s8), 0  ;;  %s3312_s7 = smov (!%p1141_p4, %s3308_s7), 16 }
  0x3e   : > { %s3314_s8 = smov (!%p1136_p6, %s3310_s8), 16  ;;  %v1428_v2 = vstv %s3312_s7  ;;  %p430_p10 = scmp.gt.s32.totalorder %s1414_s5, 0 }
  0x3f   : > { %v1433_v3 = vstv %s3314_s8  ;;  %vm259_vm0 = vcmp.gt.s32.totalorder %v1428_v2, 0  ;;  %p418_p9 = scmp.le.s32.totalorder %s3312_s7, %s3314_s8  ;;  %vm260_vm3 = vcmp.gt.s32.totalorder %v1428_v2, 1  ;;  %vm261_vm5 = vcmp.gt.s32.totalorder %v1428_v2, 2  ;;  %p1151_p11 = scmp.lt.s32.totalorder %s1414_s5, 16 }
  0x40   : > { %vm242_vm1 = vcmp.le.s32.totalorder %v1433_v3, 0  ;;  %vm243_vm2 = vcmp.le.s32.totalorder %v1433_v3, 1  ;;  %s424_s10 = scalar_select %p423_p7, %s1419_s9, 0  ;;  %vm244_vm4 = vcmp.le.s32.totalorder %v1433_v3, 2  ;;  %vm245_vm7 = vcmp.le.s32.totalorder %v1433_v3, 3 }
  0x41   : > { %s1449_s11 = scalar_select %p430_p10, %s1414_s5, 0  ;;  %vm246_vm8 = vcmp.le.s32.totalorder %v1433_v3, 4  ;;  %vm247_vm9 = vcmp.le.s32.totalorder %v1433_v3, 5  ;;  %vm248_vm10 = vcmp.le.s32.totalorder %v1433_v3, 6  ;;  %vm1457_vm11 = vmand %vm242_vm1, %vm259_vm0  ;;  %vm249_vm12 = vcmp.le.s32.totalorder %v1433_v3, 7 }
  0x42   : > { %s3316_s10 = smov (!%p1146_p8, %s424_s10), 16  ;;  %vm1479_vm0 = vmand %vm243_vm2, %vm260_vm3  ;;  %s1486_s13 = scvt.f32.s32 %s463_s24  ;;  %vm262_vm2 = vcmp.gt.s32.totalorder %v1428_v2, 3  ;;  %vm263_vm3 = vcmp.gt.s32.totalorder %v1428_v2, 4  ;;  %vm264_vm15 = vcmp.gt.s32.totalorder %v1428_v2, 5  ;;  %vm265_vm14 = vcmp.gt.s32.totalorder %v1428_v2, 6 }
  0x43   : > { %vm1508_vm6 = vmand %vm244_vm4, %vm261_vm5  ;;  %s470_s14 = smul.f32 2.0, %s1399_s12  ;;  %s557_s16 = sfloor.f32 %s1408_s19  ;;  %vm266_vm4 = vcmp.gt.s32.totalorder %v1428_v2, 7  ;;  %vm269_vm5 = vcmp.gt.s32.totalorder %v1428_v2, 10  ;;  %v323_v29 = vsel %vm1457_vm11, %v1466_v6, -inf  ;;  %v324_v30 = vsel %vm1457_vm11, %v1469_v7, -inf }
  0x44   : > { %vm1532_vm13 = vmand %vm245_vm7, %vm262_vm2  ;;  %s3318_s11 = smov (!%p1151_p11, %s1449_s11), 16  ;;  %s1564_s17 = sadd.s32 %s1486_s13, %s1393_s27  ;;  %v325_v34 = vsel %vm1479_vm0, %v1489_v9, -inf  ;;  %v327_v36 = vsel %vm1508_vm6, %v1495_v11, -inf }
  0x45   : > { %vm1558_vm1 = vmand %vm246_vm8, %vm263_vm3  ;;  %s1568_s18 = sceil.f32 %s470_s14  ;;  %vm270_vm8 = vcmp.gt.s32.totalorder %v1428_v2, 11  ;;  %p457_p12 = scmp.le.s32.totalorder %s3318_s11, %s3316_s10  ;;  %v329_v41 = vsel %vm1532_vm13, %v1515_v14, -inf  ;;  %vm2981_vm3 = vcmask 31744  }
  0x46   : > { %vm1584_vm7 = vmand %vm247_vm9, %vm264_vm15  ;;  %p466_p13 = scmp.gt.s32.totalorder %s1564_s17, 0  ;;  %p1156_p0 = scmp.lt.s32.totalorder %s1564_s17, 16  ;;  %v331_v43 = vsel %vm1558_vm1, %v1521_v16, -inf  ;;  %v356_v49 = vsel %vm2981_vm3, %v323_v29, -inf  ;;  %v357_v54 = vsel %vm2981_vm3, %v325_v34, -inf }
  0x47   : > { %vm1603_vm9 = vmand %vm248_vm10, %vm265_vm14  ;;  %s1235_s20 = scvt.f32.s32 %s1568_s18  ;;  %p1647_p1 = por %p457_p12, %p418_p9  ;;  %vm2974_vm14 = vcmp.le.s32.totalorder %v1433_v3, 8  ;;  %v333_v46 = vsel %vm1584_vm7, %v1542_v19, -inf  ;;  %v3022_v22 = vsel %vm1584_vm7, %v1545_v20, -inf }
  0x48   : > { %vm1625_vm10 = vmand %vm249_vm12, %vm266_vm4  ;;  %s1653_s24 = sfloor.f32 %s470_s14  ;;  %vm2973_vm12 = vcmp.gt.s32.totalorder %v1428_v2, 8  ;;  %vm2977_vm4 = vcmp.gt.s32.totalorder %v1428_v2, 9  ;;  %v335_v48 = vsel %vm1603_vm9, %v1548_v21, -inf  ;;  %s514_s5 = smul.f32 3.0, %s1399_s12 }
  0x49   : > { %v2971_v33 = vsel %vm1625_vm10, 4294967295, %v2970_v33  ;;  %vm1665_vm15 = vmand %vm2974_vm14, %vm2973_vm12  ;;  %s467_s25 = scalar_select %p466_p13, %s1564_s17, 0  ;;  %vm2978_vm12 = vcmp.le.s32.totalorder %v1433_v3, 9  ;;  %v337_v53 = vsel %vm1625_vm10, %v1574_v24, -inf }
  0x4a   : > { %v2976_v40 = vsel %vm1665_vm15, 4294967295, %v2975_v40  ;;  %vm1688_vm14 = vmand %vm2978_vm12, %vm2977_vm4  ;;  %s459_s26 = scalar_select %p1647_p1, 1, 0  ;;  %vm2982_vm4 = vcmp.le.s32.totalorder %v1433_v3, 10  ;;  %v339_v60 = vsel %vm1665_vm15, %v1595_v27, -inf }
  0x4b   : > { %v2980_v45 = vsel %vm1688_vm14, 4294967295, %v2979_v45  ;;  %vm1711_vm12 = vmand %vm2982_vm4, %vm269_vm5  ;;  %s3320_s25 = smov (!%p1156_p0, %s467_s25), 16  ;;  %vm2986_vm5 = vcmp.le.s32.totalorder %v1433_v3, 11  ;;  %s1751_s29 = sadd.s32 %s1235_s20, %s1393_s27  ;;  %v341_v34 = vsel %vm1688_vm14, %v1619_v32, -inf  ;;  %vm3001_vm14 = vcmp.gt.s32.totalorder %v1428_v2, 15 }
  0x4c   : > { %vm2985_vm2 = vmmov %vm2981_vm3  ;;  %s1237_s30 = scvt.f32.s32 %s1653_s24  ;;  %vm2990_vm3 = vcmp.le.s32.totalorder %v1433_v3, 12  ;;  %p474_p2 = scmp.gt.s32.totalorder %s1751_s29, 0 }
  0x4d   : > { %v358_v55 = vsel %vm2985_vm2, %v327_v36, -inf  ;;  %vm1737_vm4 = vmand %vm2986_vm5, %vm270_vm8  ;;  %v360_v62 = vsel %vm2985_vm2, %v329_v41, -inf  ;;  %vm2989_vm8 = vcmp.gt.s32.totalorder %v1428_v2, 12  ;;  %v362_v41 = vsel %vm2985_vm2, %v331_v43, -inf  ;;  %p1161_p3 = scmp.lt.s32.totalorder %s1751_s29, 16  ;;  %s1856_s13 = sceil.f32 %s514_s5 }
  0x4e   : > { %v359_v61 = vmax.f32 %v356_v49, %v358_v55  ;;  %vm1761_vm5 = vmand %vm2990_vm3, %vm2989_vm8  ;;  %v361_v36 = vmax.f32 %v357_v54, %v360_v62  ;;  %v1775_v49 = vld [vmem:[%s1404_s15 + $0xa8] sm:$0xff]  ;;  %v1778_v55 = vld [vmem:[%s1404_s15 + $0xf0] sm:$0xff]  ;;  %vm2993_vm8 = vcmp.gt.s32.totalorder %v1428_v2, 13  ;;  %vm2994_vm3 = vcmp.le.s32.totalorder %v1433_v3, 13  ;;  %s1796_s4 = sadd.s32 %s1237_s30, %s1393_s27  ;;  %s1239_s14 = scvt.f32.s32 %s1856_s13 }
  0x4f   : > { %vm1784_vm15 = vmand %vm2994_vm3, %vm2993_vm8  ;;  %v343_v54 = vsel %vm1711_vm12, %v1659_v39, -inf  ;;  %v364_v59 = vsel %vm2985_vm2, %v333_v46, -inf  ;;  %vm2997_vm8 = vcmp.gt.s32.totalorder %v1428_v2, 14  ;;  %vm2998_vm3 = vcmp.le.s32.totalorder %v1433_v3, 14  ;;  %s475_s6 = scalar_select %p474_p2, %s1751_s29, 0 }
  0x50   : > { %v363_v62 = vmax.f32 %v359_v61, %v362_v41  ;;  %vm1803_vm10 = vmand %vm2998_vm3, %vm2997_vm8  ;;  %v345_v43 = vsel %vm1737_vm4, %v1705_v50, -inf  ;;  %v347_v46 = vsel %vm1761_vm5, %v1728_v56, -inf  ;;  %v365_v61 = vmax.f32 %v361_v36, %v364_v59  ;;  %p510_p4 = scmp.gt.s32.totalorder %s1796_s4, 0  ;;  %p1166_p5 = scmp.lt.s32.totalorder %s1796_s4, 16 }
  0x51   : > { %v3000_v52 = vsel %vm1803_vm10, 4294967295, %v2999_v52  ;;  %v366_v41 = vsel %vm2985_vm2, %v335_v48, -inf  ;;  %vm3002_vm8 = vcmp.le.s32.totalorder %v1433_v3, 15  ;;  %v349_v44 = vsel %vm1784_vm15, %v1731_v57, -inf  ;;  %s3322_s6 = smov (!%p1161_p3, %s475_s6), 16  ;;  %vm3016_vm11 = vmmov %vm2985_vm2  ;;  %s1241_s17 = scvt.f32.s32 %s557_s16 }
  0x52   : > { %vm1821_vm3 = vmand %vm3002_vm8, %vm3001_vm14  ;;  %v351_v59 = vsel %vm1803_vm10, %v1755_v63, -inf  ;;  %v367_v48 = vmax.f32 %v363_v62, %v366_v41  ;;  %v368_v36 = vsel %vm2985_vm2, %v337_v53, -inf  ;;  %v344_v2 = vsel %vm1711_vm12, %v1775_v49, -inf  ;;  %s511_s9 = scalar_select %p510_p4, %s1796_s4, 0 }
  0x53   : > { %v3004_v47 = vsel %vm1821_vm3, 4294967295, %v3003_v47  ;;  %v353_v3 = vsel %vm1821_vm3, %v1778_v55, -inf  ;;  %v369_v42 = vmax.f32 %v365_v61, %v368_v36  ;;  %vm3005_vm14 = vmmov %vm2985_vm2  ;;  %v374_v51 = vsel %vm2985_vm2, %v343_v54, -inf  ;;  %p501_p6 = scmp.le.s32.totalorder %s3322_s6, %s3320_s25  ;;  %s564_s18 = smul.f32 2.0, %s1408_s19 }
  0x54   : > { %v370_v37 = vsel %vm3005_vm14, %v339_v60, -inf  ;;  %vm3006_vm8 = vmmov %vm2985_vm2  ;;  %v3013_v54 = vsel %vm1479_vm0, %v1492_v10, -inf  ;;  %s3324_s9 = smov (!%p1166_p5, %s511_s9), 16  ;;  %v3017_v36 = vsel %vm1532_vm13, %v1518_v15, -inf  ;;  %s517_s20 = sadd.s32 %s1239_s14, %s1393_s27 }
  0x55   : > { %v371_v53 = vmax.f32 %v367_v48, %v370_v37  ;;  %v372_v62 = vsel %vm3006_vm8, %v341_v34, -inf  ;;  %vm3007_vm12 = vmmov %vm2985_vm2  ;;  %v1859_v34 = vld [vmem:[%s1404_s15 + $0xb8] sm:$0xff]  ;;  %p1903_p7 = por %p501_p6, %p418_p9  ;;  %s1945_s24 = sadd.s32 %s1241_s17, %s1395_s28 }
  0x56   : > { %v376_v41 = vsel %vm3007_vm12, %v345_v43, -inf  ;;  %v373_v35 = vmax.f32 %v369_v42, %v372_v62  ;;  %vm3008_vm3 = vmmov %vm2985_vm2  ;;  %v1880_v48 = vld [vmem:[%s1404_s15 + $0xd8] sm:$0xff]  ;;  %p518_p8 = scmp.gt.s32.totalorder %s517_s20, 0  ;;  %p1171_p10 = scmp.lt.s32.totalorder %s517_s20, 16  ;;  %vm3035_vm12 = vnez %v3000_v52 }
  0x57   : > { %v378_v61 = vsel %vm3008_vm3, %v347_v46, -inf  ;;  %vm3009_vm10 = vmmov %vm2985_vm2  ;;  %v375_v43 = vmax.f32 %v371_v53, %v374_v51  ;;  %v3019_v53 = vsel %vm1558_vm1, %v1524_v17, -inf  ;;  %vm3026_vm1 = vnez %v2971_v33  ;;  %s503_s16 = scalar_select %p1903_p7, 1, 0 }
  0x58   : > { %v380_v60 = vsel %vm3009_vm10, %v349_v44, -inf  ;;  %vm3010_vm14 = vmmov %vm2985_vm2  ;;  %v377_v5 = vmax.f32 %v373_v35, %v376_v41  ;;  %v350_v28 = vsel %vm1784_vm15, %v1880_v48, -inf  ;;  %p560_p11 = scmp.gt.s32.totalorder %s1945_s24, 0  ;;  %p1176_p13 = scmp.lt.s32.totalorder %s1945_s24, 16 }
  0x59   : > { %v382_v37 = vsel %vm3010_vm14, %v351_v59, -inf  ;;  %vm3011_vm8 = vmmov %vm2985_vm2  ;;  %v1877_v59 = vld [vmem:[%s1404_s15 + $0xc8] sm:$0xff]  ;;  %v379_v18 = vmax.f32 %v375_v43, %v378_v61  ;;  %v3024_v43 = vsel %vm1603_vm9, %v1571_v23, -inf  ;;  %vm3029_vm9 = vnez %v2976_v40  ;;  %s519_s27 = scalar_select %p518_p8, %s517_s20, 0 }
  0x5a   : > { %v384_v42 = vsel %vm3011_vm8, %v353_v3, -inf  ;;  %vm3012_vm10 = vmmov %vm2985_vm2  ;;  %v381_v61 = vmax.f32 %v377_v5, %v380_v60  ;;  %v348_v58 = vsel %vm1761_vm5, %v1877_v59, -inf  ;;  %v3030_v0 = vsel %vm3029_vm9, %v1616_v31, -inf  ;;  %s561_s29 = scalar_select %p560_p11, %s1945_s24, 0 }
  0x5b   : > { %v387_v44 = vsel %vm3012_vm10, %v324_v30, -inf  ;;  %vm3014_vm3 = vmmov %vm2985_vm2  ;;  %v3015_v30 = vsel %vm1508_vm6, %v1498_v12, -inf  ;;  %v383_v33 = vmax.f32 %v379_v18, %v382_v37  ;;  %vm3032_vm5 = vnez %v2980_v45  ;;  %s3326_s27 = smov (!%p1171_p10, %s519_s27), 16  ;;  %s565_s30 = sceil.f32 %s564_s18 }
  0x5c   : > { %v388_v46 = vsel %vm3014_vm3, %v3013_v54, -inf  ;;  %v389_v8 = vsel %vm3016_vm11, %v3015_v30, -inf  ;;  %vm3018_vm0 = vmmov %vm2985_vm2  ;;  %v1920_v54 = vld [vmem:[%s1404_s15 + $0xf8] sm:$0xff]  ;;  %v346_v30 = vsel %vm1737_vm4, %v1859_v34, -inf  ;;  %v3033_v29 = vsel %vm3032_vm5, %v1656_v38, -inf  ;;  %s3328_s29 = smov (!%p1176_p13, %s561_s29), 16  ;;  %p545_p0 = scmp.le.s32.totalorder %s3326_s27, %s3324_s9 }
  0x5d   : > { %v391_v3 = vsel %vm3018_vm0, %v3017_v36, -inf  ;;  %vm3020_vm2 = vmmov %vm3018_vm0  ;;  %v390_v35 = vmax.f32 %v387_v44, %v389_v8  ;;  %v3027_v44 = vsel %vm3026_vm1, %v1592_v26, -inf  ;;  %v385_v8 = vmax.f32 %v381_v61, %v384_v42  ;;  %s1243_s4 = scvt.f32.s32 %s565_s30  ;;  %s2037_s13 = sfloor.f32 %s564_s18 }
  0x5e   : > { %v393_v62 = vsel %vm3020_vm2, %v3019_v53, -inf  ;;  %v392_v51 = vmax.f32 %v388_v46, %v391_v3  ;;  %vm3023_vm6 = vmmov %vm3018_vm0  ;;  %v352_v37 = vsel %vm3035_vm12, %v1909_v13, -inf  ;;  %vm3036_vm14 = vnez %v3004_v47  ;;  %p2031_p2 = por %p545_p0, %p418_p9  ;;  %s807_s8 = smul.f32 3.0, %s1408_s19 }
  0x5f   : > { %v395_v41 = vsel %vm3023_vm6, %v3022_v22, -inf  ;;  %vm3025_vm13 = vmmov %vm3018_vm0  ;;  %v394_v60 = vmax.f32 %v390_v35, %v393_v62  ;;  %v354_v40 = vsel %vm3036_vm14, %v1920_v54, -inf  ;;  %v434_v18 = vstv %s3316_s10  ;;  %s2051_s7 = sadd.s32 %s1243_s4, %s1395_s28  ;;  %s1245_s19 = scvt.f32.s32 %s2037_s13 }
  0x60   : > { %v397_v25 = vsel %vm3025_vm13, %v3024_v43, -inf  ;;  %vm3028_vm7 = vmmov %vm3018_vm0  ;;  %v396_v5 = vmax.f32 %v392_v51, %v395_v41  ;;  %v437_v35 = vstv %s3318_s11  ;;  %vm435_vm11 = vcmp.ge.s32.totalorder %v1423_v1, %v434_v18  ;;  %s547_s14 = scalar_select %p2031_p2, 1, 0 }
  0x61   : > { %v399_v46 = vsel %vm3028_vm7, %v3027_v44, -inf  ;;  %vm3031_vm4 = vmmov %vm3018_vm0  ;;  %v398_v42 = vmax.f32 %v394_v60, %v397_v25  ;;  %v386_v47 = vmax.f32 %v383_v33, %v385_v8  ;;  %v411_v41 = vsel %vm3018_vm0, %v350_v28, -inf  ;;  %p568_p9 = scmp.gt.s32.totalorder %s2051_s7, 0  ;;  %p1181_p1 = scmp.lt.s32.totalorder %s2051_s7, 16 }
  0x62   : > { %v401_v36 = vsel %vm3031_vm4, %v3030_v0, -inf  ;;  %vm3034_vm15 = vmmov %vm3018_vm0  ;;  %v400_v53 = vmax.f32 %v396_v5, %v399_v46  ;;  %vm438_vm2 = vcmp.lt.s32.totalorder %v1423_v1, %v437_v35  ;;  %v3041_v25 = vmov 0  ;;  %p159_p3 = scmp.lt.s32.totalorder %s1333_s1, 5  ;;  %s2110_s17 = sadd.s32 %s1245_s19, %s1395_s28 }
  0x63   : > { %v403_v3 = vsel %vm3034_vm15, %v3033_v29, -inf  ;;  %vm3037_vm8 = vmmov %vm3018_vm0  ;;  %v402_v52 = vmax.f32 %v398_v42, %v401_v36  ;;  %vm1994_vm9 = vcmp.ge.s32.totalorder %v1444_v4, %v434_v18  ;;  %vm1999_vm4 = vcmp.lt.s32.totalorder %v1444_v4, %v437_v35  ;;  %s569_s0 = scalar_select %p568_p9, %s2051_s7, 0 }
  0x64   : > { %v405_v45 = vsel %vm3037_vm8, %v344_v2, -inf  ;;  %vm3038_vm10 = vmmov %vm3018_vm0  ;;  %v404_v51 = vmax.f32 %v400_v53, %v403_v3  ;;  %v478_v2 = vstv %s3320_s25  ;;  %v481_v60 = vstv %s3322_s6  ;;  %p803_p4 = scmp.gt.s32.totalorder %s2110_s17, 0  ;;  %s3332_s1 = smov (!%p159_p3, %s1333_s1), 5 }
  0x65   : > { %v407_v62 = vsel %vm3038_vm10, %v346_v30, -inf  ;;  %vm3039_vm3 = vmmov %vm3018_vm0  ;;  %v406_v30 = vmax.f32 %v402_v52, %v405_v45  ;;  %vm1984_vm1 = vcmp.ge.s32.totalorder %v1423_v1, %v478_v2  ;;  %vm2009_vm5 = vcmp.ge.s32.totalorder %v1444_v4, %v478_v2  ;;  %s3330_s0 = smov (!%p1181_p1, %s569_s0), 16  ;;  %p1186_p5 = scmp.lt.s32.totalorder %s2110_s17, 16 }
  0x66   : > { %v409_v22 = vsel %vm3039_vm3, %v348_v58, -inf  ;;  %v408_v61 = vmax.f32 %v404_v51, %v407_v62  ;;  %vm3040_vm6 = vmmov %vm3018_vm0  ;;  %vm482_vm15 = vcmp.lt.s32.totalorder %v1423_v1, %v481_v60  ;;  %vm483_vm12 = vcmp.lt.s32.totalorder %v1444_v4, %v481_v60  ;;  %p748_p9 = scmp.le.s32.totalorder %s3330_s0, %s3328_s29 }
  0x67   : > { %v413_v43 = vsel %vm3040_vm6, %v352_v37, -inf  ;;  %vm1979_vm13 = vmand %vm435_vm11, %vm438_vm2  ;;  %v410_v5 = vmax.f32 %v406_v30, %v409_v22  ;;  %v3052_v36 = vmov 0  ;;  %v522_v29 = vstv %s3324_s9 }
  0x68   : > { %v3042_v25 = vsel %vm1979_vm13, 4294967295, %v3041_v25  ;;  %vm3045_vm7 = vmmov %vm3018_vm0  ;;  %v412_v33 = vmax.f32 %v408_v61, %v411_v41  ;;  %v446_v0 = vsel %vm1979_vm13, %v386_v47, -inf  ;;  %v525_v3 = vstv %s3326_s27  ;;  %p2472_p1 = por %p748_p9, %p457_p12  ;;  %p2485_p3 = por %p748_p9, %p501_p6 }
  0x69   : > { %v415_v46 = vsel %vm3045_vm7, %v354_v40, -inf  ;;  %vm2019_vm14 = vmand %vm1984_vm1, %vm482_vm15  ;;  %v414_v37 = vmax.f32 %v410_v5, %v413_v43  ;;  %v3055_v42 = vmov 0  ;;  %vm523_vm10 = vcmp.ge.s32.totalorder %v1423_v1, %v522_v29 }
  0x6a   : > { %v3053_v36 = vsel %vm2019_vm14, 4294967295, %v3052_v36  ;;  %v416_v40 = vmax.f32 %v412_v33, %v415_v46  ;;  %vm2043_vm8 = vmand %vm1994_vm9, %vm1999_vm4  ;;  %v490_v53 = vsel %vm2019_vm14, %v386_v47, -inf  ;;  %v3057_v45 = vmov 0  ;;  %s761_s11 = scalar_select %p2472_p1, 1, 0 }
  0x6b   : > { %v3056_v42 = vsel %vm2043_vm8, 4294967295, %v3055_v42  ;;  %vm2056_vm3 = vmand %vm2009_vm5, %vm483_vm12  ;;  %vm524_vm11 = vcmp.ge.s32.totalorder %v1444_v4, %v522_v29  ;;  %vm526_vm0 = vcmp.lt.s32.totalorder %v1423_v1, %v525_v3  ;;  %vm527_vm2 = vcmp.lt.s32.totalorder %v1444_v4, %v525_v3  ;;  %s777_s25 = scalar_select %p2485_p3, 1, 0 }
  0x6c   : > { %v3058_v45 = vsel %vm2056_vm3, 4294967295, %v3057_v45  ;;  %v417_v62 = vmax.f32 %v414_v37, %v416_v40  ;;  %v2068_v18 = vstv %s459_s26  ;;  %vm2070_vm6 = vmand %vm523_vm10, %vm526_vm0  ;;  %v3059_v35 = vmov 0  ;;  %s2104_s26 = sceil.f32 %s807_s8 }
  0x6d   : > { %v3060_v35 = vsel %vm2070_vm6, 4294967295, %v3059_v35  ;;  %vm3061_vm1 = vmmov %vm3045_vm7  ;;  %v3063_v4 = vmov 0  ;;  %v534_v51 = vsel %vm2070_vm6, %v386_v47, -inf  ;;  %v2086_v22 = vstv %s3328_s29  ;;  %s1247_s12 = scvt.f32.s32 %s2104_s26 }
  0x6e   : > { %v448_v52 = vsel %vm3061_vm1, %v446_v0, -inf  ;;  %vm3062_vm7 = vmmov %vm3061_vm1  ;;  %v447_v41 = vsel %vm2043_vm8, %v417_v62, -inf  ;;  %v491_v2 = vsel %vm2056_vm3, %v417_v62, -inf  ;;  %v2101_v44 = vstv %s503_s16  ;;  %s1199_s16 = sshll.u32 %s3332_s1, 4 }
  0x6f   : > { %v492_v1 = vsel %vm3062_vm7, %v490_v53, -inf  ;;  %vm2078_vm9 = vmand %vm524_vm11, %vm527_vm2  ;;  %v2107_v5 = vstv %s547_s14  ;;  %vm573_vm10 = vcmp.le.s32.totalorder %v2086_v22, 0  ;;  %vm574_vm11 = vcmp.le.s32.totalorder %v2086_v22, 1  ;;  %s2141_s18 = sadd.s32 %s1247_s12, %s1395_s28  ;;  %s2234_s30 = scalar_lea.vmem %s2936_s3, %s1199_s16 }
  0x70   : > { %v3064_v4 = vsel %vm2078_vm9, 4294967295, %v3063_v4  ;;  %v535_v30 = vsel %vm2078_vm9, %v417_v62, -inf  ;;  %vm3065_vm4 = vmmov %vm3061_vm1  ;;  %v2137_v40 = vstv %s3330_s0  ;;  %s804_s28 = scalar_select %p803_p4, %s2110_s17, 0  ;;  %vm3073_vm9 = vcmp.le.s32.totalorder %v2086_v22, 2 }
  0x71   : > { %v536_v61 = vsel %vm3065_vm4, %v534_v51, -inf  ;;  %vm3066_vm5 = vmmov %vm3061_vm1  ;;  %vm590_vm0 = vcmp.gt.s32.totalorder %v2137_v40, 0  ;;  %vm591_vm2 = vcmp.gt.s32.totalorder %v2137_v40, 1  ;;  %vm592_vm4 = vcmp.gt.s32.totalorder %v2137_v40, 2  ;;  %p811_p7 = scmp.gt.s32.totalorder %s2141_s18, 0  ;;  %p1191_p8 = scmp.lt.s32.totalorder %s2141_s18, 16 }
  0x72   : > { %v449_v43 = vsel %vm3066_vm5, %v447_v41, -inf  ;;  %vm3067_vm15 = vmmov %vm3061_vm1  ;;  %s3334_s28 = smov (!%p1186_p5, %s804_s28), 16  ;;  %vm3089_vm6 = vcmp.le.s32.totalorder %v2086_v22, 6  ;;  %vm3095_vm7 = vcmp.gt.s32.totalorder %v2137_v40, 7  ;;  %vm3099_vm14 = vcmask 1040384  }
  0x73   : > { %v493_v47 = vsel %vm3067_vm15, %v491_v2, -inf  ;;  %vm3068_vm12 = vmmov %vm3061_vm1  ;;  %v450_v58 = vmax.f32 %v448_v52, %v449_v43  ;;  %s812_s1 = scalar_select %p811_p7, %s2141_s18, 0  ;;  %vm3101_vm13 = vcmp.le.s32.totalorder %v2086_v22, 8 }
  0x74   : > { %v537_v46 = vsel %vm3068_vm12, %v535_v30, -inf  ;;  %v494_v28 = vmax.f32 %v492_v1, %v493_v47  ;;  %vm2149_vm15 = vmand %vm573_vm10, %vm590_vm0  ;;  %vm3076_vm0 = vcmp.gt.s32.totalorder %v2137_v40, 3  ;;  %vm3077_vm10 = vcmp.le.s32.totalorder %v2086_v22, 3 }
  0x75   : > { %v538_v60 = vmax.f32 %v536_v61, %v537_v46  ;;  %v451_v33 = vrot.slane %v450_v58, 4  ;;  %vm2157_vm12 = vmand %vm574_vm11, %vm591_vm2  ;;  %vm3080_vm11 = vcmp.gt.s32.totalorder %v2137_v40, 4  ;;  %vm3081_vm2 = vcmp.le.s32.totalorder %v2086_v22, 4  ;;  %s3336_s1 = smov (!%p1191_p8, %s812_s1), 16 }
  0x76   : > { %v495_v8 = vrot.slane %v494_v28, 4  ;;  %vm2170_vm1 = vmand %vm3073_vm9, %vm592_vm4  ;;  %vm3085_vm9 = vcmp.le.s32.totalorder %v2086_v22, 5  ;;  %vm3088_vm4 = vcmp.gt.s32.totalorder %v2137_v40, 6  ;;  %p991_p10 = scmp.le.s32.totalorder %s3336_s1, %s3334_s28  ;;  %v657_v1 = vsel %vm2157_vm12, %v1492_v10, -inf }
  0x77   : > { %v539_v0 = vrot.slane %v538_v60, 4  ;;  %v452_v29 = vmax.f32 %v450_v58, %v451_v33  ;;  %vm2183_vm5 = vmand %vm3077_vm10, %vm3076_vm0  ;;  %vm3084_vm0 = vcmp.gt.s32.totalorder %v2137_v40, 5  ;;  %vm3093_vm10 = vcmp.eq.s32.totalorder %v2101_v44, 1 }
  0x78   : > { %v496_v3 = vmax.f32 %v494_v28, %v495_v8  ;;  %vm2195_vm8 = vmand %vm3081_vm2, %vm3080_vm11  ;;  %vm3096_vm2 = vcmp.le.s32.totalorder %v2086_v22, 7  ;;  %p2317_p11 = por %p991_p10, %p457_p12  ;;  %p2327_p13 = por %p991_p10, %p501_p6 }
  0x79   : > { %v540_v37 = vmax.f32 %v538_v60, %v539_v0  ;;  %v453_v53 = vrot.slane %v452_v29, 2  ;;  %vm2207_vm3 = vmand %vm3085_vm9, %vm3084_vm0  ;;  %vm3092_vm0 = vcmp.eq.s32.totalorder %v2068_v18, 1  ;;  %v663_v30 = vsel %vm2195_vm8, %v1524_v17, -inf  ;;  %p2357_p2 = por %p991_p10, %p545_p0  ;;  %p2500_p12 = por %p748_p9, %p545_p0 }
  0x7a   : > { %v497_v62 = vrot.slane %v496_v3, 2  ;;  %vm2223_vm9 = vmand %vm3089_vm6, %vm3088_vm4  ;;  %vm3094_vm6 = vcmp.eq.s32.totalorder %v2107_v5, 1  ;;  %vm605_vm4 = vcmp.gt.s32.totalorder %v2137_v40, 15  ;;  %v654_v5 = vsel %vm2149_vm15, %v1466_v6, -inf  ;;  %s1020_s9 = scalar_select %p2327_p13, 1, 0 }
  0x7b   : > { %v541_v52 = vrot.slane %v540_v37, 2  ;;  %v454_v51 = vmax.f32 %v452_v29, %v453_v53  ;;  %vm2247_vm11 = vmand %vm3096_vm2, %vm3095_vm7  ;;  %vm3106_vm7 = vcmp.le.s32.totalorder %v2086_v22, 9  ;;  %v666_v17 = vsel %vm2223_vm9, %v1548_v21, -inf  ;;  %s793_s6 = scalar_select %p2500_p12, 1, 0 }
  0x7c   : > { %v498_v41 = vmax.f32 %v496_v3, %v497_v62  ;;  %v667_v61 = vsel %vm2223_vm9, %v1571_v23, -inf  ;;  %v669_v21 = vsel %vm2247_vm11, %v1592_v26, -inf  ;;  %vm3126_vm9 = vcmp.le.s32.totalorder %v2086_v22, 13  ;;  %s1036_s27 = scalar_select %p2357_p2, 1, 0 }
  0x7d   : > { %v542_v2 = vmax.f32 %v540_v37, %v541_v52  ;;  %v455_v43 = vrot.slane %v454_v51, 1  ;;  %v655_v52 = vsel %vm2149_vm15, %v1469_v7, -inf  ;;  %v658_v7 = vsel %vm2170_vm1, %v1495_v11, -inf }
  0x7e   : > { %v499_v47 = vrot.slane %v498_v41, 1  ;;  %vm3109_vm15 = vcmask 26624   ;;  %v661_v11 = vsel %vm2183_vm5, %v1518_v15, -inf  ;;  %v664_v15 = vsel %vm2207_vm3, %v1542_v19, -inf }
  0x7f   : > { %v543_v46 = vrot.slane %v542_v2, 1  ;;  %v456_v60 = vmax.f32 %v454_v51, %v455_v43  ;;  %v656_v51 = vsel %vm2157_vm12, %v1489_v9, -inf  ;;  %v659_v9 = vsel %vm2170_vm1, %v1498_v12, -inf }
  0x80   : > { %v500_v33 = vmax.f32 %v498_v41, %v499_v47  ;;  %v662_v12 = vsel %vm2195_vm8, %v1521_v16, -inf  ;;  %vm3116_vm1 = vcmp.gt.s32.totalorder %v2137_v40, 11  ;;  %v665_v16 = vsel %vm2207_vm3, %v1545_v20, -inf }
  0x81   : > { %v544_v8 = vmax.f32 %v542_v2, %v543_v46  ;;  %v462_v3 = vsel %vm3092_vm0, 0.0, %v456_v60  ;;  %vm3100_vm0 = vcmp.gt.s32.totalorder %v2137_v40, 8  ;;  %v660_v2 = vsel %vm2183_vm5, %v1515_v14, -inf }
  0x82   : > { %v506_v37 = vsel %vm3093_vm10, 0.0, %v500_v33  ;;  %vm2256_vm10 = vmand %vm3101_vm13, %vm3100_vm0  ;;  %vm3104_vm13 = vcmask 1041408   ;;  %vm3111_vm0 = vcmp.le.s32.totalorder %v2086_v22, 10  ;;  %vm3117_vm5 = vcmp.le.s32.totalorder %v2086_v22, 11 }
  0x83   : > { %v550_v53 = vsel %vm3094_vm6, 0.0, %v544_v8  ;;  %v552_v18 = vsel %vm3099_vm14, %v462_v3, %v506_v37  ;;  %vm3105_vm14 = vcmp.gt.s32.totalorder %v2137_v40, 9  ;;  %vm3110_vm6 = vcmp.gt.s32.totalorder %v2137_v40, 10  ;;  %vm2335_vm12 = vmand %vm3117_vm5, %vm3116_vm1 }
  0x84   : > { %v554_v41 = vsel %vm3104_vm13, %v552_v18, %v550_v53  ;;  %vm2276_vm2 = vmand %vm3106_vm7, %vm3105_vm14  ;;  %vm3121_vm8 = vcmp.gt.s32.totalorder %v2137_v40, 12  ;;  %vm3122_vm14 = vcmp.le.s32.totalorder %v2086_v22, 12  ;;  %v668_v20 = vsel %vm2247_vm11, %v1574_v24, -inf }
  0x85   : > { %556 = vst.msk [vmem:[%s2234_s30] sm:$0x7] %vm3109_vm15, %v554_v41  ;;  %vm2295_vm13 = vmand %vm3111_vm0, %vm3110_vm6  ;;  %v670_v23 = vsel %vm2256_vm10, %v1595_v27, -inf  ;;  %v671_v43 = vsel %vm2256_vm10, %v1616_v31, -inf  ;;  %vm3125_vm3 = vcmp.gt.s32.totalorder %v2137_v40, 13  ;;  %v672_v24 = vsel %vm2276_vm2, %v1619_v32, -inf }
  0x86   : > { %vm2365_vm7 = vmand %vm3122_vm14, %vm3121_vm8  ;;  %v673_v26 = vsel %vm2276_vm2, %v1656_v38, -inf  ;;  %v674_v27 = vsel %vm2295_vm13, %v1659_v39, -inf  ;;  %vm3129_vm11 = vcmask 31744   ;;  %vm3130_vm10 = vcmp.gt.s32.totalorder %v2137_v40, 14 }
  0x87   : > { %vm2385_vm15 = vmand %vm3126_vm9, %vm3125_vm3  ;;  %v686_v31 = vsel %vm3129_vm11, %v654_v5, -inf  ;;  %vm3131_vm6 = vcmp.le.s32.totalorder %v2086_v22, 14  ;;  %v675_v32 = vsel %vm2295_vm13, %v1775_v49, -inf  ;;  %v676_v58 = vsel %vm2335_vm12, %v1705_v50, -inf }
  0x88   : > { %vm2403_vm0 = vmand %vm3131_vm6, %vm3130_vm10  ;;  %vm3136_vm5 = vcmp.le.s32.totalorder %v2086_v22, 15  ;;  %v677_v8 = vsel %vm2335_vm12, %v1859_v34, -inf  ;;  %v678_v0 = vsel %vm2365_vm7, %v1728_v56, -inf  ;;  %v679_v40 = vsel %vm2365_vm7, %v1877_v59, -inf }
  0x89   : > { %vm3134_vm2 = vmmov %vm3129_vm11  ;;  %v680_v22 = vsel %vm2385_vm15, %v1731_v57, -inf }
  0x8a   : > { %v687_v28 = vsel %vm3134_vm2, %v656_v51, -inf  ;;  %vm3135_vm1 = vmmov %vm3134_vm2  ;;  %v682_v51 = vsel %vm2403_vm0, %v1755_v63, -inf }
  0x8b   : > { %v688_v60 = vsel %vm3135_vm1, %v658_v7, -inf  ;;  %vm2419_vm8 = vmand %vm3136_vm5, %vm605_vm4  ;;  %v737_v47 = vsel %vm3135_vm1, %v677_v8, -inf }
  0x8c   : > { %v689_v29 = vmax.f32 %v686_v31, %v688_v60  ;;  %vm3139_vm13 = vmmov %vm3135_vm1  ;;  %v684_v41 = vsel %vm2419_vm8, %v1778_v55, -inf }
  0x8d   : > { %v690_v3 = vsel %vm3139_vm13, %v660_v2, -inf  ;;  %vm3140_vm4 = vmmov %vm3135_vm1 }
  0x8e   : > { %v691_v37 = vmax.f32 %v687_v28, %v690_v3  ;;  %v692_v53 = vsel %vm3140_vm4, %v662_v12, -inf  ;;  %vm3141_vm12 = vmmov %vm3135_vm1 }
  0x8f   : > { %v693_v62 = vmax.f32 %v689_v29, %v692_v53  ;;  %v694_v18 = vsel %vm3141_vm12, %v664_v15, -inf  ;;  %vm3142_vm14 = vmmov %vm3135_vm1 }
  0x90   : > { %v696_v44 = vsel %vm3142_vm14, %v666_v17, -inf  ;;  %vm3143_vm3 = vmmov %vm3135_vm1  ;;  %v695_v6 = vmax.f32 %v691_v37, %v694_v18 }
  0x91   : > { %v698_v5 = vsel %vm3143_vm3, %v668_v20, -inf  ;;  %vm3144_vm7 = vmmov %vm3135_vm1  ;;  %v697_v10 = vmax.f32 %v693_v62, %v696_v44  ;;  %v717_v20 = vsel %vm3135_vm1, %v655_v52, -inf }
  0x92   : > { %v700_v7 = vsel %vm3144_vm7, %v670_v23, -inf  ;;  %vm3145_vm9 = vmmov %vm3135_vm1  ;;  %v699_v15 = vmax.f32 %v695_v6, %v698_v5 }
  0x93   : > { %v702_v2 = vsel %vm3145_vm9, %v672_v24, -inf  ;;  %vm3146_vm11 = vmmov %vm3135_vm1  ;;  %v701_v31 = vmax.f32 %v697_v10, %v700_v7 }
  0x94   : > { %v704_v12 = vsel %vm3146_vm11, %v674_v27, -inf  ;;  %vm3147_vm10 = vmmov %vm3135_vm1  ;;  %v703_v24 = vmax.f32 %v699_v15, %v702_v2 }
  0x95   : > { %v706_v14 = vsel %vm3147_vm10, %v676_v58, -inf  ;;  %vm3148_vm6 = vmmov %vm3135_vm1  ;;  %v705_v29 = vmax.f32 %v701_v31, %v704_v12 }
  0x96   : > { %v708_v17 = vsel %vm3148_vm6, %v678_v0, -inf  ;;  %vm3149_vm2 = vmmov %vm3135_vm1 }
  0x97   : > { %v710_v19 = vsel %vm3149_vm2, %v680_v22, -inf  ;;  %vm3150_vm5 = vmmov %vm3135_vm1  ;;  %v709_v37 = vmax.f32 %v705_v29, %v708_v17  ;;  %v2518_v17 = vstv %s3334_s28 }
  0x98   : > { %v718_v28 = vsel %vm3150_vm5, %v657_v1, -inf  ;;  %vm3151_vm13 = vmmov %vm3135_vm1 }
  0x99   : > { %v719_v60 = vsel %vm3151_vm13, %v659_v9, -inf  ;;  %vm3152_vm4 = vmmov %vm3135_vm1 }
  0x9a   : > { %v721_v23 = vsel %vm3152_vm4, %v661_v11, -inf  ;;  %v720_v27 = vmax.f32 %v717_v20, %v719_v60  ;;  %vm3153_vm12 = vmmov %vm3135_vm1  ;;  %v707_v11 = vmax.f32 %v703_v24, %v706_v14  ;;  %vm3170_vm4 = vnez %v3053_v36 }
  0x9b   : > { %v722_v58 = vmax.f32 %v718_v28, %v721_v23  ;;  %v723_v0 = vsel %vm3153_vm12, %v663_v30, -inf  ;;  %vm3154_vm14 = vmmov %vm3135_vm1  ;;  %v2526_v60 = vstv %s777_s25  ;;  %vm3171_vm12 = vnez %v3060_v35 }
  0x9c   : > { %v725_v52 = vsel %vm3154_vm14, %v665_v16, -inf  ;;  %vm3155_vm3 = vmmov %vm3135_vm1  ;;  %v724_v22 = vmax.f32 %v720_v27, %v723_v0  ;;  %v2530_v24 = vstv %s793_s6  ;;  %vm816_vm14 = vcmp.le.s32.totalorder %v2518_v17, 0 }
  0x9d   : > { %v727_v1 = vsel %vm3155_vm3, %v667_v61, -inf  ;;  %vm3156_vm7 = vmmov %vm3135_vm1  ;;  %v726_v30 = vmax.f32 %v722_v58, %v725_v52  ;;  %v681_v61 = vsel %vm2385_vm15, %v1880_v48, -inf }
  0x9e   : > { %v729_v9 = vsel %vm3156_vm7, %v669_v21, -inf  ;;  %vm3157_vm9 = vmmov %vm3135_vm1  ;;  %v711_v21 = vmax.f32 %v707_v11, %v710_v19  ;;  %v728_v18 = vmax.f32 %v724_v22, %v727_v1  ;;  %v2522_v19 = vstv %s761_s11 }
  0x9f   : > { %v712_v3 = vsel %vm3157_vm9, %v682_v51, -inf  ;;  %vm3158_vm11 = vmmov %vm3135_vm1  ;;  %v730_v44 = vmax.f32 %v726_v30, %v729_v9  ;;  %v685_v51 = vsel %vm2419_vm8, %v1920_v54, -inf  ;;  %vm3169_vm8 = vnez %v3042_v25 }
  0xa0   : > { %v714_v16 = vsel %vm3158_vm11, %v684_v41, -inf  ;;  %vm3159_vm10 = vmmov %vm3135_vm1  ;;  %v2549_v11 = vstv %s3336_s1 }
  0xa1   : > { %v731_v53 = vsel %vm3159_vm10, %v671_v43, -inf  ;;  %vm3160_vm6 = vmmov %vm3135_vm1  ;;  %v683_v43 = vsel %vm2403_vm0, %v1909_v13, -inf  ;;  %v715_v46 = vmax.f32 %v711_v21, %v714_v16  ;;  %vm3191_vm10 = vcmp.gt.s32.totalorder %v2549_v11, 3 }
  0xa2   : > { %v733_v62 = vsel %vm3160_vm6, %v673_v26, -inf  ;;  %v713_v26 = vmax.f32 %v709_v37, %v712_v3  ;;  %vm3163_vm2 = vmmov %vm3135_vm1  ;;  %v732_v41 = vmax.f32 %v728_v18, %v731_v53  ;;  %vm3195_vm3 = vcmp.gt.s32.totalorder %v2549_v11, 4 }
  0xa3   : > { %v735_v5 = vsel %vm3163_vm2, %v675_v32, -inf  ;;  %v734_v6 = vmax.f32 %v730_v44, %v733_v62  ;;  %vm3165_vm15 = vmmov %vm3135_vm1  ;;  %vm3187_vm2 = vcmp.gt.s32.totalorder %v2549_v11, 2 }
  0xa4   : > { %v739_v7 = vsel %vm3165_vm15, %v679_v40, -inf  ;;  %vm3166_vm0 = vmmov %vm3135_vm1  ;;  %v716_v8 = vmax.f32 %v713_v26, %v715_v46  ;;  %v736_v10 = vmax.f32 %v732_v41, %v735_v5 }
  0xa5   : > { %v741_v32 = vsel %vm3166_vm0, %v681_v61, -inf  ;;  %v738_v2 = vmax.f32 %v734_v6, %v737_v47  ;;  %vm3167_vm5 = vmmov %vm3166_vm0 }
  0xa6   : > { %v743_v12 = vsel %vm3167_vm5, %v683_v43, -inf  ;;  %vm3168_vm13 = vmmov %vm3166_vm0  ;;  %v740_v14 = vmax.f32 %v736_v10, %v739_v7  ;;  %v749_v40 = vsel %vm3169_vm8, %v716_v8, -inf  ;;  %v765_v20 = vsel %vm3170_vm4, %v716_v8, -inf }
  0xa7   : > { %v745_v33 = vsel %vm3168_vm13, %v685_v51, -inf  ;;  %v742_v15 = vmax.f32 %v738_v2, %v741_v32  ;;  %v781_v23 = vsel %vm3171_vm12, %v716_v8, -inf  ;;  %vm3172_vm9 = vmmov %vm3166_vm0  ;;  %vm3176_vm5 = vnez %v3058_v45 }
  0xa8   : > { %v744_v31 = vmax.f32 %v740_v14, %v743_v12  ;;  %v751_v58 = vsel %vm3172_vm9, %v749_v40, -inf  ;;  %vm3173_vm11 = vmmov %vm3166_vm0  ;;  %vm3177_vm13 = vnez %v3064_v4  ;;  %v3197_v7 = vmov 0  ;;  %v2645_v14 = vld [vmem:[%s1404_s15] sm:$0xff]  ;;  %v2651_v40 = vld [vmem:[%s1404_s15 + $0x8] sm:$0xff] }
  0xa9   : > { %v746_v28 = vmax.f32 %v742_v15, %v745_v33  ;;  %v767_v0 = vsel %vm3173_vm11, %v765_v20, -inf  ;;  %vm3174_vm6 = vmmov %vm3166_vm0  ;;  %vm3175_vm0 = vnez %v3056_v42  ;;  %vm3200_vm12 = vcmp.le.s32.totalorder %v2518_v17, 5  ;;  %v1288_v12 = vld [vmem:[%s1404_s15 + $0x70] sm:$0xff] }
  0xaa   : > { %v783_v29 = vsel %vm3174_vm6, %v781_v23, -inf  ;;  %vm3178_vm9 = vmmov %vm3135_vm1  ;;  %v2663_v23 = vld [vmem:[%s1404_s15 + $0x18] sm:$0xff]  ;;  %vm3224_vm4 = vcmp.le.s32.totalorder %v2518_v17, 11  ;;  %v1292_v33 = vld [vmem:[%s1404_s15 + $0x90] sm:$0xff] }
  0xab   : > { %v747_v27 = vmax.f32 %v744_v31, %v746_v28  ;;  %vm3179_vm11 = vmmov %vm3135_vm1  ;;  %v2657_v31 = vld [vmem:[%s1404_s15 + $0x10] sm:$0xff] }
  0xac   : > { %vm3180_vm6 = vmmov %vm3135_vm1  ;;  %vm833_vm1 = vcmp.gt.s32.totalorder %v2549_v11, 0 }
  0xad   : > { %v750_v52 = vsel %vm3175_vm0, %v747_v27, -inf  ;;  %v766_v1 = vsel %vm3176_vm5, %v747_v27, -inf  ;;  %v782_v9 = vsel %vm3177_vm13, %v747_v27, -inf  ;;  %vm3183_vm13 = vcmp.gt.s32.totalorder %v2549_v11, 1 }
  0xae   : > { %v752_v3 = vsel %vm3178_vm9, %v750_v52, -inf  ;;  %v768_v22 = vsel %vm3179_vm11, %v766_v1, -inf  ;;  %v784_v30 = vsel %vm3180_vm6, %v782_v9, -inf  ;;  %vm2563_vm11 = vmand %vm816_vm14, %vm833_vm1  ;;  %vm3184_vm14 = vcmp.le.s32.totalorder %v2518_v17, 1  ;;  %v1278_v1 = vld [vmem:[%s1404_s15 + $0x20] sm:$0xff] }
  0xaf   : > { %v753_v37 = vmax.f32 %v751_v58, %v752_v3  ;;  %v769_v16 = vmax.f32 %v767_v0, %v768_v22  ;;  %v785_v53 = vmax.f32 %v783_v29, %v784_v30  ;;  %vm2578_vm1 = vmand %vm3184_vm14, %vm3183_vm13  ;;  %vm3188_vm6 = vcmp.le.s32.totalorder %v2518_v17, 2  ;;  %v2688_v22 = vld [vmem:[%s1404_s15 + $0x28] sm:$0xff] }
  0xb0   : > { %vm2587_vm15 = vmand %vm3188_vm6, %vm3187_vm2  ;;  %vm3192_vm5 = vcmp.le.s32.totalorder %v2518_v17, 3  ;;  %vm3196_vm9 = vcmp.le.s32.totalorder %v2518_v17, 4  ;;  %vm3199_vm13 = vcmp.gt.s32.totalorder %v2549_v11, 5  ;;  %vm3204_vm2 = vcmp.le.s32.totalorder %v2518_v17, 6 }
  0xb1   : > { %v754_v62 = vrot.slane %v753_v37, 4  ;;  %v770_v61 = vrot.slane %v769_v16, 4  ;;  %v786_v21 = vrot.slane %v785_v53, 4  ;;  %vm2600_vm0 = vmand %vm3192_vm5, %vm3191_vm10  ;;  %vm3203_vm10 = vcmp.gt.s32.totalorder %v2549_v11, 6 }
  0xb2   : > { %vm2610_vm7 = vmand %vm3196_vm9, %vm3195_vm3  ;;  %vm3207_vm6 = vcmp.gt.s32.totalorder %v2549_v11, 7  ;;  %v897_v15 = vsel %vm2563_vm11, %v2645_v14, -inf  ;;  %v898_v20 = vsel %vm2563_vm11, %v2651_v40, -inf  ;;  %v899_v28 = vsel %vm2578_vm1, %v2657_v31, -inf  ;;  %v2731_v31 = vld [vmem:[%s1404_s15 + $0x58] sm:$0xff] }
  0xb3   : > { %v755_v43 = vmax.f32 %v753_v37, %v754_v62  ;;  %v771_v26 = vmax.f32 %v769_v16, %v770_v61  ;;  %v787_v5 = vmax.f32 %v785_v53, %v786_v21  ;;  %v3198_v7 = vsel %vm2610_vm7, 4294967295, %v3197_v7  ;;  %vm2623_vm3 = vmand %vm3200_vm12, %vm3199_vm13  ;;  %v1280_v37 = vld [vmem:[%s1404_s15 + $0x30] sm:$0xff]  ;;  %v2697_v53 = vld [vmem:[%s1404_s15 + $0x38] sm:$0xff] }
  0xb4   : > { %vm2632_vm14 = vmand %vm3204_vm2, %vm3203_vm10  ;;  %vm3208_vm12 = vcmp.le.s32.totalorder %v2518_v17, 7  ;;  %v900_v27 = vsel %vm2578_vm1, %v2663_v23, -inf  ;;  %vm3211_vm2 = vcmp.gt.s32.totalorder %v2549_v11, 8  ;;  %v901_v9 = vsel %vm2587_vm15, %v1278_v1, -inf  ;;  %v1282_v61 = vld [vmem:[%s1404_s15 + $0x40] sm:$0xff]  ;;  %v2740_v1 = vld [vmem:[%s1404_s15 + $0x68] sm:$0xff] }
  0xb5   : > { %v756_v46 = vrot.slane %v755_v43, 2  ;;  %v772_v41 = vrot.slane %v771_v26, 2  ;;  %v788_v6 = vrot.slane %v787_v5, 2  ;;  %vm2640_vm13 = vmand %vm3208_vm12, %vm3207_vm6  ;;  %vm3212_vm6 = vcmp.le.s32.totalorder %v2518_v17, 8 }
  0xb6   : > { %vm2672_vm10 = vmand %vm3212_vm6, %vm3211_vm2  ;;  %vm3215_vm12 = vcmp.gt.s32.totalorder %v2549_v11, 9  ;;  %vm3216_vm9 = vcmp.le.s32.totalorder %v2518_v17, 9  ;;  %v902_v30 = vsel %vm2587_vm15, %v2688_v22, -inf  ;;  %v903_v16 = vsel %vm2600_vm0, %v1280_v37, -inf }
  0xb7   : > { %v757_v8 = vmax.f32 %v755_v43, %v756_v46  ;;  %v773_v10 = vmax.f32 %v771_v26, %v772_v41  ;;  %v789_v2 = vmax.f32 %v787_v5, %v788_v6  ;;  %vm2683_vm5 = vmand %vm3216_vm9, %vm3215_vm12  ;;  %v904_v62 = vsel %vm2600_vm0, %v2697_v53, -inf  ;;  %v2714_v41 = vld [vmem:[%s1404_s15 + $0x48] sm:$0xff] }
  0xb8   : > { %v905_v21 = vsel %vm2610_vm7, %v1282_v61, -inf  ;;  %vm3219_vm9 = vcmp.gt.s32.totalorder %v2549_v11, 10  ;;  %vm3220_vm2 = vcmp.le.s32.totalorder %v2518_v17, 10  ;;  %vm3223_vm12 = vcmp.gt.s32.totalorder %v2549_v11, 11 }
  0xb9   : > { %v758_v58 = vrot.slane %v757_v8, 1  ;;  %v774_v0 = vrot.slane %v773_v10, 1  ;;  %v790_v29 = vrot.slane %v789_v2, 1  ;;  %vm2709_vm6 = vmand %vm3220_vm2, %vm3219_vm9  ;;  %v910_v37 = vsel %vm2632_vm14, %v2740_v1, -inf }
  0xba   : > { %vm2723_vm8 = vmand %vm3224_vm4, %vm3223_vm12  ;;  %vm3227_vm4 = vcmp.eq.s32.totalorder %v2522_v19, 1  ;;  %vm3228_vm9 = vcmp.eq.s32.totalorder %v2526_v60, 1  ;;  %vm3230_vm2 = vcmp.gt.s32.totalorder %v2549_v11, 12  ;;  %vm3231_vm12 = vcmp.le.s32.totalorder %v2518_v17, 12  ;;  %v1289_v60 = vld [vmem:[%s1404_s15 + $0x78] sm:$0xff] }
  0xbb   : > { %v759_v43 = vmax.f32 %v757_v8, %v758_v58  ;;  %v775_v26 = vmax.f32 %v773_v10, %v774_v0  ;;  %v791_v5 = vmax.f32 %v789_v2, %v790_v29  ;;  %v1284_v10 = vld [vmem:[%s1404_s15 + $0x50] sm:$0xff]  ;;  %v908_v58 = vsel %vm2623_vm3, %v2731_v31, -inf  ;;  %v1286_v0 = vld [vmem:[%s1404_s15 + $0x60] sm:$0xff]  ;;  %vm2755_vm7 = vmand %vm3231_vm12, %vm3230_vm2 }
  0xbc   : > { %v907_v2 = vsel %vm2623_vm3, %v1284_v10, -inf  ;;  %v909_v29 = vsel %vm2632_vm14, %v1286_v0, -inf  ;;  %vm3229_vm3 = vcmp.eq.s32.totalorder %v2530_v24, 1  ;;  %v911_v19 = vsel %vm2640_vm13, %v1288_v12, -inf  ;;  %v1291_v0 = vld [vmem:[%s1404_s15 + $0x88] sm:$0xff] }
  0xbd   : > { %v764_v61 = vsel %vm3227_vm4, 0.0, %v759_v43  ;;  %v780_v10 = vsel %vm3228_vm9, 0.0, %v775_v26  ;;  %v796_v32 = vsel %vm3229_vm3, 0.0, %v791_v5  ;;  %vm3234_vm14 = vcmask 1040384   ;;  %v1290_v26 = vld [vmem:[%s1404_s15 + $0x80] sm:$0xff] }
  0xbe   : > { %v797_v43 = vsel %vm3234_vm14, %v764_v61, %v780_v10  ;;  %v912_v24 = vsel %vm2640_vm13, %v1289_v60, -inf  ;;  %v913_v5 = vsel %vm2672_vm10, %v1290_v26, -inf  ;;  %v914_v1 = vsel %vm2672_vm10, %v1291_v0, -inf  ;;  %s1004_s15 = scalar_select %p2317_p11, 1, 0 }
  0xbf   : > { %vm3235_vm4 = vcmask 1041408   ;;  %vm3236_vm9 = vcmp.gt.s32.totalorder %v2549_v11, 13  ;;  %vm3237_vm3 = vcmp.le.s32.totalorder %v2518_v17, 13  ;;  %v915_v10 = vsel %vm2683_vm5, %v1292_v33, -inf }
  0xc0   : > { %v798_v6 = vsel %vm3235_vm4, %v797_v43, %v796_v32  ;;  %vm2777_vm2 = vmand %vm3237_vm3, %vm3236_vm9  ;;  %v916_v12 = vsel %vm2683_vm5, %v1656_v38, -inf  ;;  %v917_v52 = vsel %vm2709_vm6, %v1659_v39, -inf  ;;  %vm3240_vm13 = vcmask 26624  }
  0xc1   : > { %799 = vst.msk [vmem:[%s2234_s30 + $0x3] sm:$0x7] %vm3240_vm13, %v798_v6  ;;  %vm3241_vm10 = vcmp.gt.s32.totalorder %v2549_v11, 14  ;;  %vm3242_vm12 = vcmp.le.s32.totalorder %v2518_v17, 14  ;;  %v918_v43 = vsel %vm2709_vm6, %v1775_v49, -inf  ;;  %v919_v38 = vsel %vm2723_vm8, %v1705_v50, -inf }
  0xc2   : > { %vm2796_vm14 = vmand %vm3242_vm12, %vm3241_vm10  ;;  %v920_v39 = vsel %vm2723_vm8, %v1859_v34, -inf  ;;  %v921_v3 = vsel %vm2755_vm7, %v1728_v56, -inf  ;;  %vm3245_vm5 = vcmp.gt.s32.totalorder %v2549_v11, 15  ;;  %vm3246_vm4 = vcmp.le.s32.totalorder %v2518_v17, 15 }
  0xc3   : > { %vm2816_vm9 = vmand %vm3246_vm4, %vm3245_vm5  ;;  %v922_v50 = vsel %vm2755_vm7, %v1877_v59, -inf  ;;  %vm3249_vm8 = vcmask 31744   ;;  %v923_v59 = vsel %vm2777_vm2, %v1731_v57, -inf  ;;  %v924_v14 = vsel %vm2777_vm2, %v1880_v48, -inf }
  0xc4   : > { %v929_v49 = vsel %vm3249_vm8, %v897_v15, -inf  ;;  %vm3250_vm6 = vmmov %vm3249_vm8 }
  0xc5   : > { %v930_v56 = vsel %vm3250_vm6, %v899_v28, -inf  ;;  %vm3251_vm3 = vmmov %vm3250_vm6 }
  0xc6   : > { %v931_v34 = vsel %vm3251_vm3, %v901_v9, -inf  ;;  %vm3252_vm13 = vmmov %vm3251_vm3  ;;  %v925_v9 = vsel %vm2796_vm14, %v1755_v63, -inf }
  0xc7   : > { %v932_v11 = vmax.f32 %v929_v49, %v931_v34  ;;  %v933_v17 = vsel %vm3252_vm13, %v903_v16, -inf  ;;  %vm3253_vm10 = vmmov %vm3251_vm3  ;;  %v927_v16 = vsel %vm2816_vm9, %v1778_v55, -inf }
  0xc8   : > { %v935_v46 = vsel %vm3253_vm10, %v905_v21, -inf  ;;  %vm3254_vm12 = vmmov %vm3251_vm3  ;;  %v934_v15 = vmax.f32 %v930_v56, %v933_v17 }
  0xc9   : > { %v937_v8 = vsel %vm3254_vm12, %v907_v2, -inf  ;;  %vm3255_vm7 = vmmov %vm3251_vm3  ;;  %v936_v21 = vmax.f32 %v932_v11, %v935_v46  ;;  %vm3265_vm12 = vnez %v3198_v7 }
  0xca   : > { %v939_v28 = vsel %vm3255_vm7, %v909_v29, -inf  ;;  %vm3256_vm5 = vmmov %vm3251_vm3  ;;  %v938_v31 = vmax.f32 %v934_v15, %v937_v8  ;;  %v3266_v44 = vsel %vm3265_vm12, %v2714_v41, -inf }
  0xcb   : > { %v941_v2 = vsel %vm3256_vm5, %v911_v19, -inf  ;;  %vm3257_vm4 = vmmov %vm3251_vm3  ;;  %v940_v26 = vmax.f32 %v936_v21, %v939_v28 }
  0xcc   : > { %v943_v57 = vsel %vm3257_vm4, %v913_v5, -inf  ;;  %vm3258_vm8 = vmmov %vm3251_vm3  ;;  %v942_v19 = vmax.f32 %v938_v31, %v941_v2 }
  0xcd   : > { %v945_v60 = vsel %vm3258_vm8, %v915_v10, -inf  ;;  %vm3259_vm2 = vmmov %vm3251_vm3 }
  0xce   : > { %v947_v48 = vsel %vm3259_vm2, %v917_v52, -inf  ;;  %vm3260_vm6 = vmmov %vm3259_vm2  ;;  %v946_v22 = vmax.f32 %v942_v19, %v945_v60 }
  0xcf   : > { %v949_v29 = vsel %vm3260_vm6, %v919_v38, -inf  ;;  %vm3261_vm3 = vmmov %vm3259_vm2 }
  0xd0   : > { %v960_v63 = vsel %vm3261_vm3, %v898_v20, -inf  ;;  %vm3262_vm13 = vmmov %vm3259_vm2  ;;  %v944_v20 = vmax.f32 %v940_v26, %v943_v57  ;;  %v950_v41 = vmax.f32 %v946_v22, %v949_v29 }
  0xd1   : > { %v961_v55 = vsel %vm3262_vm13, %v900_v27, -inf  ;;  %vm3263_vm10 = vmmov %vm3259_vm2 }
  0xd2   : > { %v962_v5 = vsel %vm3263_vm10, %v902_v30, -inf  ;;  %vm3264_vm11 = vmmov %vm3259_vm2  ;;  %v948_v0 = vmax.f32 %v944_v20, %v947_v48 }
  0xd3   : > { %v964_v18 = vsel %vm3264_vm11, %v904_v62, -inf  ;;  %vm3267_vm1 = vmmov %vm3259_vm2  ;;  %v963_v23 = vmax.f32 %v960_v63, %v962_v5 }
  0xd4   : > { %v966_v40 = vsel %vm3267_vm1, %v3266_v44, -inf  ;;  %v965_v27 = vmax.f32 %v961_v55, %v964_v18  ;;  %vm3268_vm7 = vmmov %vm3267_vm1 }
  0xd5   : > { %v968_v47 = vsel %vm3268_vm7, %v908_v58, -inf  ;;  %vm3269_vm15 = vmmov %vm3267_vm1  ;;  %v967_v7 = vmax.f32 %v963_v23, %v966_v40  ;;  %vm3283_vm7 = vnez %v3042_v25  ;;  %v1005_v23 = vstv %s1004_s15 }
  0xd6   : > { %v951_v30 = vsel %vm3269_vm15, %v921_v3, -inf  ;;  %vm3270_vm5 = vmmov %vm3267_vm1  ;;  %v969_v61 = vmax.f32 %v965_v27, %v968_v47  ;;  %vm3285_vm15 = vnez %v3060_v35  ;;  %v1021_v27 = vstv %s1020_s9 }
  0xd7   : > { %v970_v51 = vsel %vm3270_vm5, %v910_v37, -inf  ;;  %vm3271_vm4 = vmmov %vm3267_vm1  ;;  %v952_v58 = vmax.f32 %v948_v0, %v951_v30  ;;  %v926_v37 = vsel %vm2796_vm14, %v1909_v13, -inf }
  0xd8   : > { %v972_v53 = vsel %vm3271_vm4, %v912_v24, -inf  ;;  %vm3272_vm0 = vmmov %vm3267_vm1  ;;  %v971_v3 = vmax.f32 %v967_v7, %v970_v51  ;;  %v1037_v51 = vstv %s1036_s27 }
  0xd9   : > { %v953_v62 = vsel %vm3272_vm0, %v923_v59, -inf  ;;  %vm3273_vm8 = vmmov %vm3272_vm0  ;;  %v973_v49 = vmax.f32 %v969_v61, %v972_v53 }
  0xda   : > { %v955_v33 = vsel %vm3273_vm8, %v925_v9, -inf  ;;  %vm3274_vm2 = vmmov %vm3272_vm0  ;;  %v954_v24 = vmax.f32 %v950_v41, %v953_v62  ;;  %vm3288_vm8 = vnez %v3056_v42 }
  0xdb   : > { %v974_v10 = vsel %vm3274_vm2, %v914_v1, -inf  ;;  %vm3275_vm6 = vmmov %vm3272_vm0  ;;  %v928_v1 = vsel %vm2816_vm9, %v1920_v54, -inf  ;;  %v956_v11 = vmax.f32 %v952_v58, %v955_v33  ;;  %vm3284_vm9 = vnez %v3053_v36 }
  0xdc   : > { %v976_v52 = vsel %vm3275_vm6, %v916_v12, -inf  ;;  %vm3276_vm3 = vmmov %vm3272_vm0  ;;  %v975_v12 = vmax.f32 %v971_v3, %v974_v10  ;;  %vm3289_vm2 = vnez %v3058_v45  ;;  %vm3290_vm6 = vnez %v3064_v4 }
  0xdd   : > { %v957_v38 = vsel %vm3276_vm3, %v927_v16, -inf  ;;  %vm3277_vm13 = vmmov %vm3272_vm0  ;;  %v977_v17 = vmax.f32 %v973_v49, %v976_v52 }
  0xde   : > { %v978_v56 = vsel %vm3277_vm13, %v918_v43, -inf  ;;  %vm3278_vm10 = vmmov %vm3272_vm0  ;;  %v958_v46 = vmax.f32 %v954_v24, %v957_v38 }
  0xdf   : > { %v980_v34 = vsel %vm3278_vm10, %v920_v39, -inf  ;;  %vm3279_vm11 = vmmov %vm3272_vm0  ;;  %v979_v15 = vmax.f32 %v975_v12, %v978_v56 }
  0xe0   : > { %v982_v8 = vsel %vm3279_vm11, %v922_v50, -inf  ;;  %vm3280_vm12 = vmmov %vm3272_vm0  ;;  %v981_v32 = vmax.f32 %v977_v17, %v980_v34  ;;  %v959_v13 = vmax.f32 %v956_v11, %v958_v46  ;;  %vm1006_vm11 = vcmp.eq.s32.totalorder %v1005_v23, 1 }
  0xe1   : > { %v984_v59 = vsel %vm3280_vm12, %v924_v14, -inf  ;;  %vm3281_vm14 = vmmov %vm3272_vm0  ;;  %v983_v39 = vmax.f32 %v979_v15, %v982_v8  ;;  %vm1022_vm12 = vcmp.eq.s32.totalorder %v1021_v27, 1 }
  0xe2   : > { %v986_v28 = vsel %vm3281_vm14, %v926_v37, -inf  ;;  %vm3282_vm1 = vmmov %vm3272_vm0  ;;  %v985_v9 = vmax.f32 %v981_v32, %v984_v59  ;;  %v992_v54 = vsel %vm3283_vm7, %v959_v13, -inf  ;;  %v1008_v21 = vsel %vm3284_vm9, %v959_v13, -inf }
  0xe3   : > { %v988_v43 = vsel %vm3282_vm1, %v928_v1, -inf  ;;  %v987_v6 = vmax.f32 %v983_v39, %v986_v28  ;;  %v1024_v50 = vsel %vm3285_vm15, %v959_v13, -inf  ;;  %vm3286_vm5 = vmmov %vm3272_vm0  ;;  %vm1038_vm14 = vcmp.eq.s32.totalorder %v1037_v51, 1 }
  0xe4   : > { %v989_v16 = vmax.f32 %v985_v9, %v988_v43  ;;  %v994_v2 = vsel %vm3286_vm5, %v992_v54, -inf  ;;  %vm3287_vm4 = vmmov %vm3272_vm0  ;;  %v1026_v57 = vsel %vm3272_vm0, %v1024_v50, -inf  ;;  %vm3294_vm1 = vcmask 1040384  }
  0xe5   : > { %v1010_v31 = vsel %vm3287_vm4, %v1008_v21, -inf  ;;  %vm3291_vm3 = vmmov %vm3272_vm0  ;;  %vm3295_vm7 = vcmask 1041408   ;;  %vm3296_vm9 = vcmask 26624  }
  0xe6   : > { %v990_v14 = vmax.f32 %v987_v6, %v989_v16  ;;  %vm3292_vm13 = vmmov %vm3272_vm0 }
  0xe7   : > { %vm3293_vm10 = vmmov %vm3272_vm0 }
  0xe8   : > { %v993_v25 = vsel %vm3288_vm8, %v990_v14, -inf  ;;  %v1009_v60 = vsel %vm3289_vm2, %v990_v14, -inf  ;;  %v1025_v36 = vsel %vm3290_vm6, %v990_v14, -inf }
  0xe9   : > { %v995_v35 = vsel %vm3291_vm3, %v993_v25, -inf  ;;  %v1011_v48 = vsel %vm3292_vm13, %v1009_v60, -inf  ;;  %v1027_v26 = vsel %vm3293_vm10, %v1025_v36, -inf }
  0xea   : > { %v996_v29 = vmax.f32 %v994_v2, %v995_v35  ;;  %v1012_v63 = vmax.f32 %v1010_v31, %v1011_v48  ;;  %v1028_v55 = vmax.f32 %v1026_v57, %v1027_v26 }
  0xec   : > { %v997_v19 = vrot.slane %v996_v29, 4  ;;  %v1013_v42 = vrot.slane %v1012_v63, 4  ;;  %v1029_v5 = vrot.slane %v1028_v55, 4 }
  0xee   : > { %v998_v45 = vmax.f32 %v996_v29, %v997_v19  ;;  %v1014_v4 = vmax.f32 %v1012_v63, %v1013_v42  ;;  %v1030_v18 = vmax.f32 %v1028_v55, %v1029_v5 }
  0xf0   : > { %v999_v44 = vrot.slane %v998_v45, 2  ;;  %v1015_v40 = vrot.slane %v1014_v4, 2  ;;  %v1031_v20 = vrot.slane %v1030_v18, 2 }
  0xf2   : > { %v1000_v47 = vmax.f32 %v998_v45, %v999_v44  ;;  %v1016_v22 = vmax.f32 %v1014_v4, %v1015_v40  ;;  %v1032_v30 = vmax.f32 %v1030_v18, %v1031_v20 }
  0xf4   : > { %v1001_v53 = vrot.slane %v1000_v47, 1  ;;  %v1017_v0 = vrot.slane %v1016_v22, 1  ;;  %v1033_v62 = vrot.slane %v1032_v30, 1 }
  0xf6   : > { %v1002_v7 = vmax.f32 %v1000_v47, %v1001_v53  ;;  %v1018_v61 = vmax.f32 %v1016_v22, %v1017_v0  ;;  %v1034_v41 = vmax.f32 %v1032_v30, %v1033_v62 }
  0xf8   : > { %v1007_v33 = vsel %vm1006_vm11, 0.0, %v1002_v7  ;;  %v1023_v10 = vsel %vm1022_vm12, 0.0, %v1018_v61  ;;  %v1039_v52 = vsel %vm1038_vm14, 0.0, %v1034_v41 }
  0xf9   : > { %v1040_v58 = vsel %vm3294_vm1, %v1007_v33, %v1023_v10 }
  0xfa   : > { %v1041_v38 = vsel %vm3295_vm7, %v1040_v58, %v1039_v52 }
  0xfb   : > { %1042 = vst.msk [vmem:[%s2234_s30 + $0x6] sm:$0x7] %vm3296_vm9, %v1041_v38 }
  0xfc PF: > { %s23_s22 = sadd.s32 1, %s1341_s22   ;;  %s3297_s1 = smov %s1337_s21 }
  0xfd   : > { %p20_p6 = scmp.ge.s32.totalorder %s23_s22, 8   ;;  %s3298_s21 = smov %s3300_s23 }
  0xff   :  { %22 = sbr.rel (!%p20_p6) target bundleno = 27 (0x1b), region = 54 }

</bundles_post_ra>
